<compile_context>
chip_gen: v7x
topology: tpu7x:2x2x1
jax: 0.10.0
libtpu: 0.0.40
codegen_flags: <defaults>
</compile_context>

<pallas_src>
import jax
import jax.numpy as jnp
from jax.experimental import pallas as pl
from jax.experimental.pallas import tpu as pltpu


def _bilinear_matrix(in_size: int, out_size: int) -> jnp.ndarray:
    """(out_size, in_size) matrix reproducing F.interpolate(mode='bilinear',
    align_corners=False) along one spatial axis (rows sum to 1)."""
    o = jnp.arange(out_size, dtype=jnp.float32)
    src = (o + 0.5) * (in_size / out_size) - 0.5
    src = jnp.maximum(src, 0.0)  # PyTorch clamps negative source coords to 0
    i0 = jnp.clip(jnp.floor(src).astype(jnp.int32), 0, in_size - 1)
    i1 = jnp.clip(i0 + 1, 0, in_size - 1)
    w1 = src - i0.astype(jnp.float32)
    w0 = 1.0 - w1
    m = jnp.zeros((out_size, in_size), jnp.float32)
    rows = jnp.arange(out_size)
    m = m.at[rows, i0].add(w0)
    m = m.at[rows, i1].add(w1)
    return m


def _interp_conv_kernel(x_ref, wconv_ref, shift_ref, wwT_ref, o_ref):
    c_tile, OH, OW = o_ref.shape
    H, W = OH // 2, OW // 2

    # (1) 1x1 conv at LOW resolution (commutes with the linear upsample).
    #     BN scale is pre-folded into the bf16 weights; f32 accumulation on MXU.
    z = jnp.einsum('oc,chw->ohw', wconv_ref[...], x_ref[...],
                   preferred_element_type=jnp.float32)           # (ct, H, W) f32
    # BN shift: bilinear rows sum to 1, so adding it before the upsample is
    # identical to adding it after (and 4x cheaper).
    z = z + shift_ref[...][:, :, None]

    # (2) H-axis x2 bilinear (align_corners=False) as VPU blends at low W res:
    #       out[2h]   = 0.25*z[h-1] + 0.75*z[h]     (row 0 clamped)
    #       out[2h+1] = 0.75*z[h]   + 0.25*z[h+1]   (row H-1 clamped)
    z_prev = jnp.concatenate([z[:, :1, :], z[:, :-1, :]], axis=1)
    z_next = jnp.concatenate([z[:, 1:, :], z[:, -1:, :]], axis=1)
    even = 0.25 * z_prev + 0.75 * z
    odd = 0.75 * z + 0.25 * z_next
    rows = jnp.stack([even, odd], axis=2)                        # (ct, H, 2, W)
    rows = rows.reshape(c_tile * OH, W).astype(jnp.bfloat16)     # row-major == (ct, OH, W)

    # (3) W-axis x2 bilinear as ONE 2D MXU matmul (M=ct*OH, K=W, N=OW); its
    #     row-major (ct*OH, OW) result is exactly the (ct, OH, OW) output tile.
    up = jnp.dot(rows, wwT_ref[...], preferred_element_type=jnp.float32)

    # (4) ReLU + store.
    o_ref[...] = jnp.maximum(up, 0.0).reshape(c_tile, OH, OW).astype(o_ref.dtype)


def _channel_tile(c_out: int, target: int = 64) -> int:
    """Largest multiple-of-8 divisor of c_out that is <= target (else no tiling)."""
    if c_out <= target:
        return c_out
    for t in range(target, 7, -1):
        if c_out % t == 0 and t % 8 == 0:
            return t
    return c_out


def interp_conv(x, conv_w, bn_gamma, bn_beta, bn_mean, bn_var, eps=1e-5,
                out_dtype=None):
    """x: (N, C_in, H, W); conv_w: (C_out, C_in, 1, 1); BN params: (C_out,)."""
    N, C_in, H, W = x.shape
    C_out = conv_w.shape[0]
    OH, OW = 2 * H, 2 * W
    if out_dtype is None:
        # TODO(synk): downstream consumers could take bf16 here to halve the
        # dominant HBM store traffic; keeping the input dtype for exactness.
        out_dtype = x.dtype

    # W-axis interpolation matrix, transposed for a right-multiplication.
    wwT = _bilinear_matrix(W, OW).T.astype(jnp.bfloat16)         # (W, OW)

    # Fold BN (eval mode) into the conv weight (scale) + per-channel shift.
    # TODO(synk): training-mode BN (batch statistics) would need a cross-batch
    # reduction pass; eval-mode running-stat semantics are implemented here.
    scale_vec = bn_gamma / jnp.sqrt(bn_var + eps)
    shift_vec = bn_beta - bn_mean * scale_vec
    wconv = (conv_w.reshape(C_out, C_in).astype(jnp.float32)
             * scale_vec[:, None]).astype(jnp.bfloat16)          # (C_out, C_in)
    shift = shift_vec.reshape(C_out, 1).astype(jnp.float32)      # (C_out, 1)

    x_bf = x.astype(jnp.bfloat16)

    c_tile = _channel_tile(C_out)
    n_ct = C_out // c_tile

    out = pl.pallas_call(
        _interp_conv_kernel,
        out_shape=jax.ShapeDtypeStruct((N, C_out, OH, OW), out_dtype),
        grid=(N, n_ct),  # c varies fastest -> x block stays resident per batch
        in_specs=[
            pl.BlockSpec((pl.Squeezed(), C_in, H, W), lambda n, c: (n, 0, 0, 0)),
            pl.BlockSpec((c_tile, C_in), lambda n, c: (c, 0)),
            pl.BlockSpec((c_tile, 1), lambda n, c: (c, 0)),
            pl.BlockSpec((W, OW), lambda n, c: (0, 0)),
        ],
        out_specs=pl.BlockSpec((pl.Squeezed(), c_tile, OH, OW),
                               lambda n, c: (n, c, 0, 0)),
        compiler_params=pltpu.CompilerParams(
            dimension_semantics=("parallel", "parallel"),
            vmem_limit_bytes=48 * 1024 * 1024,
        ),
    )(x_bf, wconv, shift, wwT)
    return out


def interp_conv_ref(x, conv_w, bn_gamma, bn_beta, bn_mean, bn_var, eps=1e-5):
    """Pure-JAX f32 reference in the module's original order:
    upsample -> 1x1 conv -> BN(eval) -> ReLU."""
    N, C_in, H, W = x.shape
    C_out = conv_w.shape[0]
    wh = _bilinear_matrix(H, 2 * H)
    ww = _bilinear_matrix(W, 2 * W)
    up = jnp.einsum('ph,nchw->ncpw', wh, x)
    up = jnp.einsum('ncpw,qw->ncpq', up, ww)
    y = jnp.einsum('oc,ncpq->nopq', conv_w.reshape(C_out, C_in), up)
    scale = bn_gamma / jnp.sqrt(bn_var + eps)
    shift = bn_beta - bn_mean * scale
    y = y * scale[None, :, None, None] + shift[None, :, None, None]
    return jnp.maximum(y, 0.0)


if __name__ == "__main__":
    key = jax.random.PRNGKey(0)
    k_x, k_w = jax.random.split(key)

    N, C_in, C_out, H, W = 2, 4, 8, 16, 16
    x = jax.random.normal(k_x, (N, C_in, H, W), dtype=jnp.float32)

    # Deterministic parameters (PyTorch-default BN init; random conv weight).
    conv_w = 0.1 * jax.random.normal(k_w, (C_out, C_in, 1, 1), dtype=jnp.float32)
    bn_gamma = jnp.ones((C_out,), jnp.float32)
    bn_beta = jnp.zeros((C_out,), jnp.float32)
    bn_mean = jnp.zeros((C_out,), jnp.float32)
    bn_var = jnp.ones((C_out,), jnp.float32)

    out = interp_conv(x, conv_w, bn_gamma, bn_beta, bn_mean, bn_var)
    out = jax.block_until_ready(out)

    ref = interp_conv_ref(x, conv_w, bn_gamma, bn_beta, bn_mean, bn_var)
    assert out.shape == (N, C_out, 2 * H, 2 * W), out.shape
    # bf16 matmul operands -> loosened tolerance vs the f32 reference.
    assert jnp.allclose(out.astype(jnp.float32), ref, rtol=2e-2, atol=2e-2), (
        float(jnp.max(jnp.abs(out.astype(jnp.float32) - ref))))

    print("KERNEL_OK")
</pallas_src>

<mosaic_0001>
module attributes {stable_mosaic.version = 11 : i64} {
  func.func @_interp_conv_kernel(%arg0: i32, %arg1: i32, %arg2: memref<1x4x16x16xbf16, #tpu.memory_space<vmem>>, %arg3: memref<8x4xbf16, #tpu.memory_space<vmem>>, %arg4: memref<8x1xf32, #tpu.memory_space<vmem>>, %arg5: memref<16x32xbf16, #tpu.memory_space<vmem>>, %arg6: memref<1x8x32x32xf32, #tpu.memory_space<vmem>>) attributes {dimension_semantics = [#tpu.dimension_semantics<parallel>, #tpu.dimension_semantics<parallel>], iteration_bounds = array<i64: 2, 1>, scalar_prefetch = 0 : i64, scratch_operands = 0 : i64, tpu.core_type = #tpu.core_type<tc>, window_params = [{transform_indices = @transform_0, window_bounds = array<i64: 1, 4, 16, 16>}, {transform_indices = @transform_1, window_bounds = array<i64: 8, 4>}, {transform_indices = @transform_2, window_bounds = array<i64: 8, 1>}, {pipeline_mode = #tpu.pipeline_mode<synchronous>, transform_indices = @transform_3, window_bounds = array<i64: 16, 32>}, {transform_indices = @transform_4, window_bounds = array<i64: 1, 8, 32, 32>}]} {
    %c0 = arith.constant 0 : index
    %c0_0 = arith.constant 0 : index
    %0 = vector.load %arg3[%c0, %c0_0] : memref<8x4xbf16, #tpu.memory_space<vmem>>, vector<8x4xbf16>
    %c0_1 = arith.constant 0 : index
    %c0_2 = arith.constant 0 : index
    %c0_3 = arith.constant 0 : index
    %c0_4 = arith.constant 0 : index
    %1 = vector.load %arg2[%c0_1, %c0_2, %c0_3, %c0_4] : memref<1x4x16x16xbf16, #tpu.memory_space<vmem>>, vector<1x4x16x16xbf16>
    %2 = vector.shape_cast %1 : vector<1x4x16x16xbf16> to vector<4x16x16xbf16>
    "tpu.trace_start"() <{level = 10 : i32, message = "oc,chw->ohw"}> : () -> ()
    %cst = arith.constant dense<0.000000e+00> : vector<8x16x16xf32>
    %3 = tpu.matmul %0, %2, %cst {dimension_numbers = #tpu.dot_dimension_numbers<[1], [0], [0], [1, 2], [0, 0, 1, 1, 1, 2], [], []>} : vector<8x4xbf16>, vector<4x16x16xbf16>, vector<8x16x16xf32> -> vector<8x16x16xf32>
    "tpu.trace_stop"() : () -> ()
    %c0_5 = arith.constant 0 : index
    %c0_6 = arith.constant 0 : index
    %4 = vector.load %arg4[%c0_5, %c0_6] : memref<8x1xf32, #tpu.memory_space<vmem>>, vector<8x1xf32>
    %5 = vector.shape_cast %4 : vector<8x1xf32> to vector<8x1x1xf32>
    %6 = vector.broadcast %5 : vector<8x1x1xf32> to vector<8x16x16xf32>
    %7 = arith.addf %3, %6 : vector<8x16x16xf32>
    %8 = vector.extract_strided_slice %7 {offsets = [0, 0, 0], sizes = [8, 1, 16], strides = [1, 1, 1]} : vector<8x16x16xf32> to vector<8x1x16xf32>
    %9 = vector.extract_strided_slice %7 {offsets = [0, 0, 0], sizes = [8, 15, 16], strides = [1, 1, 1]} : vector<8x16x16xf32> to vector<8x15x16xf32>
    %10 = tpu.concatenate %8, %9 in 1 : vector<8x1x16xf32>, vector<8x15x16xf32> -> vector<8x16x16xf32>
    %11 = vector.extract_strided_slice %7 {offsets = [0, 1, 0], sizes = [8, 15, 16], strides = [1, 1, 1]} : vector<8x16x16xf32> to vector<8x15x16xf32>
    %12 = vector.extract_strided_slice %7 {offsets = [0, 15, 0], sizes = [8, 1, 16], strides = [1, 1, 1]} : vector<8x16x16xf32> to vector<8x1x16xf32>
    %13 = tpu.concatenate %11, %12 in 1 : vector<8x15x16xf32>, vector<8x1x16xf32> -> vector<8x16x16xf32>
    %cst_7 = arith.constant 2.500000e-01 : f32
    %14 = vector.broadcast %cst_7 : f32 to vector<8x16x16xf32>
    %15 = arith.mulf %14, %10 : vector<8x16x16xf32>
    %cst_8 = arith.constant 7.500000e-01 : f32
    %16 = vector.broadcast %cst_8 : f32 to vector<8x16x16xf32>
    %17 = arith.mulf %16, %7 : vector<8x16x16xf32>
    %18 = arith.addf %15, %17 : vector<8x16x16xf32>
    %cst_9 = arith.constant 7.500000e-01 : f32
    %19 = vector.broadcast %cst_9 : f32 to vector<8x16x16xf32>
    %20 = arith.mulf %19, %7 : vector<8x16x16xf32>
    %cst_10 = arith.constant 2.500000e-01 : f32
    %21 = vector.broadcast %cst_10 : f32 to vector<8x16x16xf32>
    %22 = arith.mulf %21, %13 : vector<8x16x16xf32>
    %23 = arith.addf %20, %22 : vector<8x16x16xf32>
    %24 = vector.shape_cast %18 : vector<8x16x16xf32> to vector<8x16x1x16xf32>
    %25 = vector.shape_cast %23 : vector<8x16x16xf32> to vector<8x16x1x16xf32>
    %26 = tpu.concatenate %24, %25 in 2 : vector<8x16x1x16xf32>, vector<8x16x1x16xf32> -> vector<8x16x2x16xf32>
    %27 = vector.shape_cast %26 : vector<8x16x2x16xf32> to vector<256x16xf32>
    %28 = arith.truncf %27 : vector<256x16xf32> to vector<256x16xbf16>
    %c0_11 = arith.constant 0 : index
    %c0_12 = arith.constant 0 : index
    %29 = vector.load %arg5[%c0_11, %c0_12] : memref<16x32xbf16, #tpu.memory_space<vmem>>, vector<16x32xbf16>
    %cst_13 = arith.constant dense<0.000000e+00> : vector<256x32xf32>
    %30 = tpu.matmul %28, %29, %cst_13 {dimension_numbers = #tpu.dot_dimension_numbers<[1], [0], [0], [1], [0, 0, 1, 1], [], []>} : vector<256x16xbf16>, vector<16x32xbf16>, vector<256x32xf32> -> vector<256x32xf32>
    %cst_14 = arith.constant 0.000000e+00 : f32
    %31 = vector.broadcast %cst_14 : f32 to vector<256x32xf32>
    %32 = arith.maximumf %30, %31 : vector<256x32xf32>
    %33 = vector.shape_cast %32 : vector<256x32xf32> to vector<8x32x32xf32>
    %c0_15 = arith.constant 0 : index
    %c0_16 = arith.constant 0 : index
    %c0_17 = arith.constant 0 : index
    %c0_18 = arith.constant 0 : index
    %34 = vector.load %arg6[%c0_15, %c0_16, %c0_17, %c0_18] : memref<1x8x32x32xf32, #tpu.memory_space<vmem>>, vector<1x8x32x32xf32>
    %35 = vector.shape_cast %34 : vector<1x8x32x32xf32> to vector<8x32x32xf32>
    %36 = vector.shape_cast %33 : vector<8x32x32xf32> to vector<1x8x32x32xf32>
    tpu.vector_store %arg6[%c0_15, %c0_16, %c0_17, %c0_18], %36 {strides = array<i32>} : memref<1x8x32x32xf32, #tpu.memory_space<vmem>>, vector<1x8x32x32xf32>,
    return
  }
  func.func @transform_0(%arg0: i32, %arg1: i32) -> (i32, i32, i32, i32) {
    %c0_i32 = arith.constant 0 : i32
    %c0_i32_0 = arith.constant 0 : i32
    %c0_i32_1 = arith.constant 0 : i32
    %c0_i32_2 = arith.constant 0 : i32
    return %arg0, %c0_i32, %c0_i32_0, %c0_i32_1 : i32, i32, i32, i32
  }
  func.func @transform_1(%arg0: i32, %arg1: i32) -> (i32, i32) {
    %c0_i32 = arith.constant 0 : i32
    %c0_i32_0 = arith.constant 0 : i32
    return %arg1, %c0_i32 : i32, i32
  }
  func.func @transform_2(%arg0: i32, %arg1: i32) -> (i32, i32) {
    %c0_i32 = arith.constant 0 : i32
    %c0_i32_0 = arith.constant 0 : i32
    return %arg1, %c0_i32 : i32, i32
  }
  func.func @transform_3(%arg0: i32, %arg1: i32) -> (i32, i32) {
    %c0_i32 = arith.constant 0 : i32
    %c0_i32_0 = arith.constant 0 : i32
    %c0_i32_1 = arith.constant 0 : i32
    return %c0_i32, %c0_i32_0 : i32, i32
  }
  func.func @transform_4(%arg0: i32, %arg1: i32) -> (i32, i32, i32, i32) {
    %c0_i32 = arith.constant 0 : i32
    %c0_i32_0 = arith.constant 0 : i32
    %c0_i32_1 = arith.constant 0 : i32
    return %arg0, %arg1, %c0_i32, %c0_i32_0 : i32, i32, i32, i32
  }
}

</mosaic_0001>

<bundles_post_ra>
// kernel: tpu_custom_call.1
= control target key start
LH: loop header
LB: loop body
LE: loop exit
PB: predicated region body
PF: predicated region fallthrough
CT: control target
= control target key end

     0   :  { %9 = vsyncpa [#allocation3], 0  ;;  %s6933_s0 = inlined_call_operand.hbm [shape: bf16[2,4,16,16], index: 0, kind: input, shape index: {}]   ;;  %s6934_s1 = inlined_call_operand.vmem [shape: bf16[8,4], index: 1, kind: input, shape index: {}]   ;;  %s6935_s2 = inlined_call_operand.vmem [shape: f32[8,1], index: 2, kind: input, shape index: {}]   ;;  %s6936_s3 = inlined_call_operand.vmem [shape: bf16[16,32], index: 3, kind: input, shape index: {}]   ;;  %s6937_s4 = inlined_call_operand.hbm [shape: f32[2,8,32,32], index: 4, kind: output, shape index: {}]  }
   0x1   :  { %11 = vsyncpa [#allocation3 + $0x1], 0 }
   0x2   :  { %12 = vsyncpa [#allocation4], 0 }
   0x3   :  { %14 = vsyncpa [#allocation4 + $0x1], 0  ;;  %s5366_s15 = smov 0   ;;  %s5368_s16 = smov 0  }
   0x4   :  { %s5370_s17 = smov 0   ;;  %s5372_s18 = smov 0  }
   0x5   :  { %s5374_s19 = smov 0   ;;  %s5376_s20 = smov 0  }
   0x6 LB: > { %s5016_s21 = sadd.s32 4294967295, %s5322_s20   ;;  %s5017_s22 = sadd.s32 4294967294, %s5322_s20   ;;  %s5322_s20 = sphi %s5376_s20, %s20_s20   ;;  %s5318_s19 = sphi %s5374_s19, %s7065_s19   ;;  %s5314_s18 = sphi %s5372_s18, %s7064_s18   ;;  %s5310_s17 = sphi %s5370_s17, %s7063_s17   ;;  %s5306_s16 = sphi %s5368_s16, %s7062_s16   ;;  %s5302_s15 = sphi %s5366_s15, %s7061_s15  }
   0x7   : > { %s32_s23 = sadd.s32 1, %s5318_s19  ;;  %s39_s24 = sadd.s32 1, %s5310_s17 }
   0x8   : > { %p34_p0 = scmp.ge.s32.totalorder %s32_s23, 2  ;;  %p46_p1 = scmp.ne.s32.totalorder %s5310_s17, %s5306_s16 }
   0x9   : > { %p47_p2 = scmp.eq.s32.totalorder %s5322_s20, 0  ;;  %p52_p3 = scmp.ne.s32.totalorder %s5306_s16, %s5302_s15 }
   0xa   : > { %s7067_s23 = smov (%p34_p0, %s32_s23), 0  ;;  %p53_p5 = scmp.eq.s32.totalorder %s5016_s21, 0 }
   0xb   : > { %p5407_p4 = por %p47_p2, %p46_p1  ;;  %s36_s26 = ssub.s32 %s5318_s19, %s7067_s23 }
   0xc   : > { %p151_p6 = scmp.eq.s32.totalorder %s5016_s21, 1  ;;  %p37_p7 = scmp.eq.s32.totalorder %s36_s26, 0 }
   0xd   : > { %p5413_p8 = por %p53_p5, %p52_p3  ;;  %p157_p10 = scmp.eq.s32.totalorder %s5017_s22, 1 }
   0xe   : > { %p5417_p9 = por %p151_p6, %p46_p1  ;;  %p5141_p13 = scmp.lt.s32.totalorder %s5322_s20, 2 }
   0xf   : > { %s5422_s29 = scalar_select %p37_p7, %s5310_s17, %s39_s24  }
  0x10   : > { %s6976_s28 = scalar_select %p5417_p9, 1, 0 }
  0x11   : > { %p5424_p11 = por %p157_p10, %p52_p3  ;;  %s194_s5 = sand.u32 1, %s5310_s17  }
  0x12   : > { %s5022_s6 = sshll.u32 %s194_s5, 5  ;;  %s5066_s7 = sshll.u32 %s5318_s19, 9 }
  0x13   : > { %s6977_s30 = scalar_select %p5424_p11, 1, 0 }
  0x14   : > { %s5435_s10 = scalar_lea.hbm %s6933_s0, %s5066_s7  ;;  %s198_s11 = scalar_lea.vmem [#allocation2], %s5022_s6 }
  0x15   : > { %s205_s12 = sshll.u32 %s198_s11, 4  ;;  %p5441_p0 = pnand %p5141_p13, %p5407_p4  ;;  %s5437_s12 = int_to_ptr.vmem [resolvable:$true] %s205_s12 }
  0x16   : > { %s5446_s14 = scalar_lea.sflag [#allocation3], %s194_s5  ;;  %s5210_s21 = scalar_lea.hbm %s5435_s10, 512 }
  0x17   : > { %p5211_p2 = scmp.ne.s32.totalorder %s5435_s10, %s5210_s21  ;;  %p5212_p3 = pneg %p5441_p0 }
  0x18   : > { %s5215_s25 = scalar_lea.hbm %s6933_s0, 1024  ;;  %p5216_p4 = scmp.lt.u32.totalorder %s5435_s10, %s6933_s0 }
  0x19   : > { %p5213_p5 = pnand %p5212_p3, %p5211_p2  ;;  %p5217_p7 = scmp.lt.u32.totalorder %s5215_s25, %s5210_s21 }
  0x1a   : > { %p5219_p13 = scmp.lt.u32.totalorder %s5210_s21, %s5435_s10 }
  0x1b   : > { %p5214_p6 = pneg %p5213_p5  ;;  %p5218_p10 = por %p5217_p7, %p5216_p4 }
  0x1d   : > { %p5220_p12 = por %p5219_p13, %p5218_p10 }
  0x1f   : > { %p5221_p1 = pnand %p5220_p12, %p5214_p6 }
  0x21   : > { %5224 = shalt.err (!%p5221_p1)
}
  0x22   : > { %s5225_s5 = scalar_lea.vmem %s5437_s12, 512  ;;  %s5324_s7 = smov [#allocation2]  }
  0x23   : > { %p5226_p2 = scmp.ne.s32.totalorder %s5437_s12, %s5225_s5  ;;  %s5230_s8 = sshll.u32 %s5324_s7, 4  ;;  %s5231_s8 = int_to_ptr.vmem [resolvable:$false] %s5230_s8 }
  0x24   : > { %s5232_s9 = scalar_lea.vmem %s5231_s8, 1024  ;;  %p5233_p9 = scmp.lt.s32.totalorder %s5437_s12, %s5231_s8 }
  0x25   : > { %p5228_p5 = pnand %p5226_p2, %p5212_p3  ;;  %p5234_p4 = scmp.lt.s32.totalorder %s5232_s9, %s5225_s5 }
  0x27   : > { %p5229_p11 = pneg %p5228_p5  ;;  %p5235_p7 = por %p5234_p4, %p5233_p9 }
  0x29   : > { %p5236_p10 = pnand %p5235_p7, %p5229_p11 }
  0x2b   : > { %5239 = shalt.err (!%p5236_p10)
}
  0x2c   : > { %s5325_s11 = smov 64   ;;  %s5326_s21 = smov 4  }
  0x2d   : > { %5136 = dma.hbm_to_vmem [thread:$0]  (!%p5441_p0), %s5435_s10, 512, %s5437_s12, %s5446_s14, %s5325_s11, %s5325_s11, %s5326_s21  }
  0x2e   : > { %p213_p12 = scmp.lt.s32.totalorder %s5322_s20, 3  ;;  %p6979_p1 = scmp.ge.s32.totalorder %s5322_s20, 1 }
  0x30   : > { %p214_p3 = pnand %p6979_p1, %p213_p12 }
  0x32   : > { %217 = sbr.rel (%p214_p3) target bundleno = 1066 (0x42a), region = 36 }
  0x39   : > { %s5478_s22 = sand.u32 1, %s5306_s16  }
  0x3a   : > { %s5026_s24 = sshll.u32 %s5478_s22, 5  ;;  %s220_s25 = scalar_lea.sflag [#allocation3], %s5478_s22 }
  0x3b   : > { %s5482_s26 = scalar_lea.vmem [#allocation2], %s5026_s24 }
  0x3c   : > { %5293 = dma.done.wait (%p5413_p8), %s220_s25, 512  }
  0x3d   : > { %5295 = vsyncadd (%p5413_p8), %s220_s25, 4294966784  ;;  %v281_v0 = vlaneseq  ;;  %v5327_v1 = vmov 1983009808   ;;  %v5328_v4 = vmov 1934713408   ;;  %v5329_v6 = vmov 0  }
  0x3e   : > { %v416_v2 = vunpack.c.l.s4 %v5327_v1  ;;  %v433_v5 = vunpack.c.l.s4 %v5328_v4  ;;  %5207 = vset.pattern.permute.xlu1 %v5329_v6  ;;  %5206 = vset.pattern.permute.xlu0 %v5329_v6  ;;  %v267_v10 = vld [vmem:[%s5482_s26] sm:$0xf]  ;;  %v269_v11 = vld [vmem:[%s5482_s26 + $0x8] sm:$0xf]  ;;  %v271_v12 = vld [vmem:[%s5482_s26 + $0x10] sm:$0xf] }
  0x3f   : > { %v5488_v3 = vshrl.u32 %v281_v0, 7  ;;  %869 = vmatprep.mubr.bf16.mxu0 %v5329_v6  ;;  %v273_v13 = vld [vmem:[%s5482_s26 + $0x18] sm:$0xf]  ;;  %v392_v14 = vpack.i.b16 %v269_v11, %v267_v10  ;;  %v393_v15 = vshrl.u32 %v267_v10, 16  ;;  %v394_v16 = vshrl.u32 %v269_v11, 16  ;;  %s5331_s27 = smov 64  }
  0x40   : > { %v417_v7 = vunpack.c.0.s8 %v416_v2  ;;  %v434_v8 = vunpack.c.0.s8 %v433_v5  ;;  %v399_v17 = vshrl.u32 %v271_v12, 16  ;;  %v398_v18 = vpack.i.b16 %v273_v13, %v271_v12  ;;  %v268_v21 = vld [vmem:[%s5482_s26 + $0x4] sm:$0xf]  ;;  %v270_v22 = vld [vmem:[%s5482_s26 + $0xc] sm:$0xf]  ;;  %s5332_s10 = smov 32  }
  0x41   : > { %v400_v19 = vshrl.u32 %v273_v13, 16  ;;  %v272_v24 = vld [vmem:[%s5482_s26 + $0x14] sm:$0xf]  ;;  %v274_v25 = vld [vmem:[%s5482_s26 + $0x1c] sm:$0xf]  ;;  %v404_v26 = vpack.i.b16 %v270_v22, %v268_v21  ;;  %v395_v27 = vpack.i.b16 %v394_v16, %v393_v15  ;;  %v405_v28 = vshrl.u32 %v268_v21, 16 }
  0x42   : > { %v5491_v9 = vsub.s32 %v417_v7, %v5488_v3  ;;  %v5498_v20 = vsub.s32 %v434_v8, %v5488_v3  ;;  %v410_v30 = vpack.i.b16 %v274_v25, %v272_v24  ;;  %v406_v32 = vshrl.u32 %v270_v22, 16  ;;  %s5333_s12 = smov 96   ;;  %s5334_s13 = smov 16   ;;  %v275_v6 = vld [vmem:[%s6935_s2] sm:$0xff] }
  0x43   : > { %v401_v31 = vpack.i.b16 %v400_v19, %v399_v17  ;;  %v411_v35 = vshrl.u32 %v272_v24, 16  ;;  %v412_v36 = vshrl.u32 %v274_v25, 16  ;;  %v5330_v53 = vmov 1966171168   ;;  %s5335_s5 = smov 48   ;;  %s5336_s7 = smov 80  }
  0x44   : > { %6980 = vst [vmem:[#allocation8_spill] sm:$0xff] %v5491_v9  ;;  %v421_v23 = vrot.slane %v392_v14, %v5491_v9  ;;  %v429_v29 = vrot.slane %v398_v18, %v5491_v9  ;;  %v489_v33 = vrot.slane %v404_v26, %v5491_v9  ;;  %v455_v34 = vrot.slane %v395_v27, %v5491_v9  ;;  %s5337_s8 = smov 112   ;;  %s5027_s25 = sshll.u32 %s5478_s22, 8 }
  0x45   : > { %v497_v39 = vrot.slane %v410_v30, %v5491_v9  ;;  %v463_v40 = vrot.slane %v401_v31, %v5491_v9  ;;  %v407_v41 = vpack.i.b16 %v406_v32, %v405_v28  ;;  %v413_v42 = vpack.i.b16 %v412_v36, %v411_v35  ;;  %s6811_s26 = scalar_lea.vmem [#allocation5], %s5027_s25  ;;  %p7058_p9 = scmp.ne.s32.totalorder %s6976_s28, 0 }
  0x46   : > { %v431_v37 = vcombine.high %v421_v23, %v429_v29  ;;  %v430_v38 = vcombine.low %v421_v23, %v429_v29  ;;  %v279_v54 = vunpack.c.l.s4 %v5330_v53  ;;  %v277_v13 = vcombine.high %v275_v6, %v275_v6 }
  0x47   : > { %v498_v45 = vcombine.low %v489_v33, %v497_v39  ;;  %v464_v46 = vcombine.low %v455_v34, %v463_v40  ;;  %v499_v47 = vcombine.high %v489_v33, %v497_v39  ;;  %v523_v48 = vrot.slane %v407_v41, %v5491_v9 }
  0x48   : > { %v445_v43 = vrot.slane %v431_v37, %v5498_v20  ;;  %v5512_v44 = vrot.slane %v430_v38, %v5498_v20  ;;  %v531_v49 = vrot.slane %v413_v42, %v5491_v9  ;;  %v280_v60 = vunpack.c.0.s8 %v279_v54 }
  0x49   : > { %v5519_v52 = vrot.slane %v498_v45, %v5498_v20  ;;  %v472_v56 = vrot.slane %v464_v46, %v5498_v20  ;;  %v513_v58 = vrot.slane %v499_v47, %v5498_v20  ;;  %v465_v1 = vcombine.high %v455_v34, %v463_v40 }
  0x4a   : > { %v5031_v50 = vcombine.low %v445_v43, %v445_v43  ;;  %v5067_v51 = vcombine.high %v5512_v44, %v5512_v44  ;;  %v5069_v55 = vcombine.high %v445_v43, %v445_v43  ;;  %v532_v59 = vcombine.low %v523_v48, %v531_v49 }
  0x4b   : > { %v5071_v57 = vcombine.high %v5519_v52, %v5519_v52  ;;  %v5028_v61 = vcombine.low %v472_v56, %v472_v56  ;;  %v5038_v62 = vcombine.low %v513_v58, %v513_v58  ;;  %v5531_v0 = vsub.s32 %v280_v60, %v5488_v3 }
  0x4c   : > { %568 = vrot.lane.b32.xlu0 %v5031_v50, %s5331_s27  ;;  %558 = vrot.lane.b32.xlu1 %v5067_v51, %s5332_s10  ;;  %v540_v63 = vrot.slane %v532_v59, %v5498_v20  ;;  %v5073_v4 = vcombine.high %v513_v58, %v513_v58  ;;  %v533_v5 = vcombine.high %v523_v48, %v531_v49  ;;  %v5546_v17 = vsub.s32 0, %v5488_v3 }
  0x4d   : > { %v479_v7 = vrot.slane %v465_v1, %v5498_v20  ;;  %v284_v8 = vrot.slane %v275_v6, %v5531_v0  ;;  %v5068_v10 = vcombine.high %v472_v56, %v472_v56  ;;  %v291_v23 = vrot.slane %v277_v13, %v5531_v0 }
  0x4e   : > { %v5035_v2 = vcombine.low %v540_v63, %v540_v63  ;;  %v5072_v11 = vcombine.high %v540_v63, %v540_v63  ;;  %v547_v12 = vrot.slane %v533_v5, %v5498_v20  ;;  %vm620_vm0 = vcmask 130048   ;;  %v266_v5 = vld [vmem:[%s6934_s1] sm:$0xf] }
  0x4f   : > { %v5032_v14 = vcombine.low %v479_v7, %v479_v7  ;;  %v292_v16 = vcombine.high %v284_v8, %v284_v8  ;;  %v5070_v18 = vcombine.high %v479_v7, %v479_v7  ;;  %v300_v19 = vrot.slane %v284_v8, %v5531_v0 }
  0x50   : > { %578 = vrot.lane.b32.xlu0 %v5069_v55, %s5333_s12  ;;  %593 = vrot.lane.b32.xlu1 %v5071_v57, %s5332_s10  ;;  %v5039_v15 = vcombine.low %v547_v12, %v547_v12  ;;  %v5074_v21 = vcombine.high %v547_v12, %v547_v12  ;;  %v293_v27 = vcombine.high %v291_v23, %v291_v23  ;;  %vm624_vm1 = vcmask 261120  }
  0x51   : > { %v314_v22 = vrot.slane %v292_v16, %v5531_v0  ;;  %v329_v24 = vrot.slane %v300_v19, %v5546_v17  ;;  %v322_v25 = vcombine.high %v300_v19, %v300_v19  ;;  %v307_v28 = vrot.slane %v291_v23, %v5531_v0 }
  0x52   : > { %v321_v31 = vrot.slane %v293_v27, %v5531_v0  ;;  %vm627_vm2 = vcmask 392192   ;;  %vm630_vm3 = vcmask 523264   ;;  %vm633_vm4 = vcmask 654336  }
  0x53   : > { %v333_v3 = vrot.slane %v314_v22, %v5546_v17  ;;  %v324_v26 = vcombine.high %v314_v22, %v314_v22  ;;  %v337_v30 = vrot.slane %v322_v25, %v5546_v17  ;;  %v345_v32 = vrot.slane %v307_v28, %v5546_v17 }
  0x54   : > { %553 = vrot.lane.b32.xlu0 %v5028_v61, %s5334_s13  ;;  %603 = vrot.lane.b32.xlu1 %v5038_v62, %s5331_s27  ;;  %v349_v33 = vrot.slane %v321_v31, %v5546_v17  ;;  %v325_v34 = vcombine.high %v321_v31, %v321_v31  ;;  %v323_v35 = vcombine.high %v307_v28, %v307_v28  ;;  %vm636_vm5 = vcmask 785408  }
  0x55   : > { %v341_v29 = vrot.slane %v324_v26, %v5546_v17  ;;  %vm639_vm6 = vcmask 916480   ;;  %vm832_vm7 = vcmask 1041408   ;;  %vm828_vm8 = vcmask 31744  }
  0x56   : > { %v357_v36 = vrot.slane %v325_v34, %v5546_v17  ;;  %v353_v37 = vrot.slane %v323_v35, %v5546_v17  ;;  %vm1210_vm9 = vcmask 1040384   ;;  %vm1259_vm10 = vcmask 1046528  }
  0x58   : > { %588 = vrot.lane.b32.xlu0 %v5035_v2, %s5334_s13  ;;  %613 = vrot.lane.b32.xlu1 %v5073_v4, %s5333_s12 }
  0x5c   : > { %563 = vrot.lane.b32.xlu0 %v5068_v10, %s5335_s5  ;;  %598 = vrot.lane.b32.xlu1 %v5072_v11, %s5335_s5 }
  0x60   : > { %573 = vrot.lane.b32.xlu0 %v5032_v14, %s5336_s7  ;;  %608 = vrot.lane.b32.xlu1 %v5039_v15, %s5336_s7 }
  0x64   : > { %583 = vrot.lane.b32.xlu0 %v5070_v18, %s5337_s8  ;;  %618 = vrot.lane.b32.xlu1 %v5074_v21, %s5337_s8 }
  0x68   : > { %359 = vperm.xlu0 %5206, %v329_v24   ;;  %363 = vperm.xlu1 %5207, %v333_v3  }
  0x6c   : > { %371 = vperm.xlu0 %5206, %v341_v29   ;;  %367 = vperm.xlu1 %5207, %v337_v30  }
  0x70   : > { %379 = vperm.xlu0 %5206, %v349_v33   ;;  %375 = vperm.xlu1 %5207, %v345_v32  }
  0x74   : > { %387 = vperm.xlu0 %5206, %v357_v36   ;;  %383 = vperm.xlu1 %5207, %v353_v37  }
  0xbe   : > { %v569_v38 = vpop.permute.xlu0 %568  ;;  %v559_v39 = vpop.permute.xlu1 %558 }
  0xc2   : > { %v579_v40 = vpop.permute.xlu0 %578  ;;  %v594_v41 = vpop.permute.xlu1 %593 }
  0xc6   : > { %v554_v42 = vpop.permute.xlu0 %553  ;;  %v604_v43 = vpop.permute.xlu1 %603 }
  0xc7   : > { %v623_v47 = vsel %vm620_vm0, %v5512_v44, %v554_v42 }
  0xc8   : > { %v626_v50 = vsel %vm624_vm1, %v623_v47, %v559_v39 }
  0xca   : > { %v589_v45 = vpop.permute.xlu0 %588  ;;  %v614_v46 = vpop.permute.xlu1 %613 }
  0xcb   : > { %v644_v48 = vsel %vm620_vm0, %v5519_v52, %v589_v45 }
  0xcc   : > { %v646_v51 = vsel %vm624_vm1, %v644_v48, %v594_v41 }
  0xce   : > { %v564_v49 = vpop.permute.xlu0 %563  ;;  %v599_v53 = vpop.permute.xlu1 %598 }
  0xcf   : > { %v629_v54 = vsel %vm627_vm2, %v626_v50, %v564_v49  ;;  %v648_v55 = vsel %vm627_vm2, %v646_v51, %v599_v53 }
  0xd0   : > { %v632_v44 = vsel %vm630_vm3, %v629_v54, %v569_v38  ;;  %v650_v57 = vsel %vm630_vm3, %v648_v55, %v604_v43 }
  0xd2   : > { %v574_v56 = vpop.permute.xlu0 %573  ;;  %v609_v52 = vpop.permute.xlu1 %608 }
  0xd3   : > { %v635_v58 = vsel %vm633_vm4, %v632_v44, %v574_v56  ;;  %v652_v59 = vsel %vm633_vm4, %v650_v57, %v609_v52 }
  0xd4   : > { %v654_v62 = vsel %vm636_vm5, %v652_v59, %v614_v46  ;;  %v638_v63 = vsel %vm636_vm5, %v635_v58, %v579_v40 }
  0xd6   : > { %v584_v60 = vpop.permute.xlu0 %583  ;;  %v619_v61 = vpop.permute.xlu1 %618 }
  0xd7   : > { %v656_v1 = vsel %vm639_vm6, %v654_v62, %v619_v61  ;;  %v641_v2 = vsel %vm639_vm6, %v638_v63, %v584_v60 }
  0xd8   : > { %5042 = vmatprep.subr.msk.bf16.mxu0 %vm832_vm7, %v656_v1  ;;  %v833_v4 = vsel %vm832_vm7, %v641_v2, 0 }
  0xd9   : > { %838 = vmatpush1.bf16.msra.mxu0 %v833_v4 }
  0xdc   : > { %5043 = vmatmul.mubr.msk.bf16.vlgmr.msra.gmra.mrb[0].mxu0 %vm828_vm8, %v266_v5 }
  0xe7   : > { %v360_v6 = vpop.permute.xlu0 %359  ;;  %v364_v7 = vpop.permute.xlu1 %363 }
  0xeb   : > { %v372_v8 = vpop.permute.xlu0 %371  ;;  %v368_v10 = vpop.permute.xlu1 %367 }
  0xec   : > { %v673_v11 = vcombine.low %v364_v7, %v372_v8  ;;  %v657_v12 = vcombine.low %v360_v6, %v368_v10  ;;  %v674_v13 = vcombine.high %v364_v7, %v372_v8  ;;  %v658_v14 = vcombine.high %v360_v6, %v368_v10 }
  0xee   : > { %v681_v15 = vrot.slane %v673_v11, %v5491_v9  ;;  %v665_v16 = vrot.slane %v657_v12, %v5491_v9  ;;  %v688_v21 = vrot.slane %v674_v13, %v5491_v9  ;;  %v672_v22 = vrot.slane %v658_v14, %v5491_v9 }
  0xef   : > { %v380_v18 = vpop.permute.xlu0 %379  ;;  %v376_v19 = vpop.permute.xlu1 %375 }
  0xf0   : > { %v721_v23 = vcombine.low %v665_v16, %v681_v15  ;;  %v722_v24 = vcombine.high %v665_v16, %v681_v15  ;;  %v737_v30 = vcombine.low %v672_v22, %v688_v21  ;;  %v738_v40 = vcombine.high %v672_v22, %v688_v21  ;;  %v5209_v15 = vld [vmem:[%s6936_s3] sm:$0xff]  }
  0xf1   : > { %5093 = vmatprep.subr.bf16.mxu0 %v5209_v15  ;;  %5127 = vmatprep.subr.bf16.mxu1 %v5209_v15 }
  0xf2   : > { %v729_v35 = vrot.slane %v721_v23, %v5498_v20  ;;  %v736_v39 = vrot.slane %v722_v24, %v5498_v20  ;;  %v745_v41 = vrot.slane %v737_v30, %v5498_v20  ;;  %v752_v49 = vrot.slane %v738_v40, %v5498_v20  ;;  %5094 = vmatpush3.bf16.msra.mxu0 %v5209_v15 }
  0xf3   : > { %v388_v25 = vpop.permute.xlu0 %387  ;;  %v384_v3 = vpop.permute.xlu1 %383  ;;  %5128 = vmatpush3.bf16.msra.mxu1 %v5209_v15 }
  0xf4   : > { %v705_v26 = vcombine.low %v380_v18, %v388_v25  ;;  %v706_v27 = vcombine.high %v380_v18, %v388_v25  ;;  %v689_v28 = vcombine.low %v376_v19, %v384_v3  ;;  %v690_v29 = vcombine.high %v376_v19, %v384_v3 }
  0xf6   : > { %v713_v31 = vrot.slane %v705_v26, %v5491_v9  ;;  %v720_v32 = vrot.slane %v706_v27, %v5491_v9  ;;  %v697_v33 = vrot.slane %v689_v28, %v5491_v9  ;;  %v704_v34 = vrot.slane %v690_v29, %v5491_v9 }
  0xf8   : > { %v753_v36 = vcombine.low %v697_v33, %v713_v31  ;;  %v754_v37 = vcombine.high %v697_v33, %v713_v31  ;;  %v769_v38 = vcombine.low %v704_v34, %v720_v32  ;;  %v770_v42 = vcombine.high %v704_v34, %v720_v32 }
  0xfa   : > { %v761_v43 = vrot.slane %v753_v36, %v5498_v20  ;;  %v768_v45 = vrot.slane %v754_v37, %v5498_v20  ;;  %v777_v46 = vrot.slane %v769_v38, %v5498_v20  ;;  %v784_v54 = vrot.slane %v770_v42, %v5498_v20 }
  0xfc   : > { %v786_v47 = vcombine.high %v729_v35, %v761_v43  ;;  %v787_v48 = vcombine.low %v736_v39, %v768_v45  ;;  %v785_v50 = vcombine.low %v729_v35, %v761_v43  ;;  %v788_v51 = vcombine.high %v736_v39, %v768_v45 }
  0xfd   : > { %v789_v53 = vcombine.low %v745_v41, %v777_v46  ;;  %v790_v55 = vcombine.high %v745_v41, %v777_v46  ;;  %v791_v56 = vcombine.low %v752_v49, %v784_v54  ;;  %v792_v44 = vcombine.high %v752_v49, %v784_v54 }
  0xfe   : > { %794 = vrot.lane.b32.xlu1 %v786_v47, %s5334_s13  ;;  %798 = vrot.lane.b32.xlu0 %v787_v48, %s5332_s10 }
 0x102   : > { %802 = vrot.lane.b32.xlu1 %v788_v51, %s5335_s5  ;;  %806 = vrot.lane.b32.xlu0 %v789_v53, %s5331_s27 }
 0x106   : > { %810 = vrot.lane.b32.xlu1 %v790_v55, %s5336_s7  ;;  %814 = vrot.lane.b32.xlu0 %v791_v56, %s5333_s12 }
 0x10a   : > { %818 = vrot.lane.b32.xlu1 %v792_v44, %s5337_s8 }
 0x170   : > { %v795_v57 = vpop.permute.xlu1 %794  ;;  %v799_v52 = vpop.permute.xlu0 %798 }
 0x171   : > { %v821_v59 = vsel %vm620_vm0, %v785_v50, %v795_v57 }
 0x172   : > { %v822_v61 = vsel %vm624_vm1, %v821_v59, %v799_v52 }
 0x174   : > { %v803_v58 = vpop.permute.xlu1 %802  ;;  %v807_v60 = vpop.permute.xlu0 %806 }
 0x175   : > { %v823_v63 = vsel %vm627_vm2, %v822_v61, %v803_v58 }
 0x176   : > { %v824_v1 = vsel %vm630_vm3, %v823_v63, %v807_v60 }
 0x178   : > { %v811_v62 = vpop.permute.xlu1 %810  ;;  %v815_v4 = vpop.permute.xlu0 %814 }
 0x179   : > { %v825_v2 = vsel %vm633_vm4, %v824_v1, %v811_v62 }
 0x17a   : > { %v826_v6 = vsel %vm636_vm5, %v825_v2, %v815_v4 }
 0x17c   : > { %v819_v5 = vpop.permute.xlu1 %818 }
 0x17d   : > { %v827_v7 = vsel %vm639_vm6, %v826_v6, %v819_v5 }
 0x1af   : > { %v871_v8 = vpop.f32.mrb[0].mxu0 }
 0x1b0   : > { %v872_v10 = vadd.f32 %v871_v8, %v827_v7  ;;  %v873_v11 = vpop.f32.mrb[1].mxu0 }
 0x1b1   : > { %v5614_v12 = vadd.f32 %v873_v11, %v827_v7  ;;  %v875_v13 = vpop.f32.mrb[2].mxu0 }
 0x1b2   : > { %v876_v14 = vpop.f32.mrb[3].mxu0  ;;  %882 = vrot.lane.b32.xlu1 %v872_v10, %s5333_s12  ;;  %879 = vrot.lane.b32.xlu0 %v872_v10, %s5337_s8 }
 0x1b6   : > { %888 = vrot.lane.b32.xlu1 %v872_v10, %s5331_s27  ;;  %885 = vrot.lane.b32.xlu0 %v872_v10, %s5336_s7 }
 0x1ba   : > { %894 = vrot.lane.b32.xlu1 %v872_v10, %s5332_s10  ;;  %891 = vrot.lane.b32.xlu0 %v872_v10, %s5335_s5 }
 0x1be   : > { %901 = vrot.lane.b32.xlu1 %v5614_v12, %s5337_s8  ;;  %897 = vrot.lane.b32.xlu0 %v872_v10, %s5334_s13 }
 0x1c2   : > { %907 = vrot.lane.b32.xlu1 %v5614_v12, %s5336_s7  ;;  %904 = vrot.lane.b32.xlu0 %v5614_v12, %s5333_s12 }
 0x1c6   : > { %913 = vrot.lane.b32.xlu1 %v5614_v12, %s5335_s5  ;;  %910 = vrot.lane.b32.xlu0 %v5614_v12, %s5331_s27  ;;  %s5075_s27 = sshll.u32 %s5314_s18, 12  ;;  %s4886_s18 = scalar_lea.sflag [#allocation4], %s5478_s22 }
 0x1c7   : > { %s6876_s14 = scalar_lea.hbm %s6937_s4, %s5075_s27  ;;  %s5338_s5 = smov [#allocation5]  }
 0x1c8   : > { %s5244_s7 = sshll.u32 %s5338_s5, 4  ;;  %s5245_s7 = int_to_ptr.vmem [resolvable:$false] %s5244_s7 }
 0x1c9   : > { %s5246_s8 = scalar_lea.vmem %s5245_s7, 8192 }
 0x1ca   : > { %919 = vrot.lane.b32.xlu1 %v5614_v12, %s5334_s13  ;;  %916 = vrot.lane.b32.xlu0 %v5614_v12, %s5332_s10  ;;  %s4902_s10 = sshll.u32 %s6811_s26, 4  ;;  %s6878_s10 = int_to_ptr.vmem [resolvable:$true] %s4902_s10 }
 0x1cb   : > { %s5240_s6 = scalar_lea.vmem %s6878_s10, 4096  ;;  %p5247_p6 = scmp.lt.s32.totalorder %s6878_s10, %s5245_s7 }
 0x1cc   : > { %p5241_p8 = scmp.ne.s32.totalorder %s6878_s10, %s5240_s6  ;;  %p5248_p13 = scmp.lt.s32.totalorder %s5246_s8, %s5240_s6 }
 0x1ce   : > { %p5242_p11 = pnand %p5241_p8, %p7058_p9  ;;  %p5249_p2 = por %p5248_p13, %p5247_p6 }
 0x1d0   : > { %p5243_p0 = pneg %p5242_p11 }
 0x1d2   : > { %p5250_p5 = pnand %p5249_p2, %p5243_p0 }
 0x224   : > { %v883_v16 = vpop.permute.xlu1 %882  ;;  %v880_v18 = vpop.permute.xlu0 %879 }
 0x225   : > { %v923_v19 = vcombine.high %v872_v10, %v883_v16  ;;  %v922_v25 = vcombine.low %v872_v10, %v883_v16 }
 0x227   : > { %v937_v3 = vrot.slane %v923_v19, %v5491_v9  ;;  %v930_v32 = vrot.slane %v922_v25, %v5491_v9 }
 0x228   : > { %v889_v21 = vpop.permute.xlu1 %888  ;;  %v886_v22 = vpop.permute.xlu0 %885 }
 0x229   : > { %v938_v23 = vcombine.low %v880_v18, %v886_v22  ;;  %v939_v24 = vcombine.high %v880_v18, %v886_v22 }
 0x22b   : > { %v953_v26 = vrot.slane %v939_v24, %v5491_v9  ;;  %v946_v27 = vrot.slane %v938_v23, %v5491_v9 }
 0x22c   : > { %v895_v28 = vpop.permute.xlu1 %894  ;;  %v892_v29 = vpop.permute.xlu0 %891 }
 0x22d   : > { %v1002_v30 = vcombine.low %v937_v3, %v953_v26  ;;  %v1003_v31 = vcombine.high %v937_v3, %v953_v26  ;;  %v955_v33 = vcombine.high %v889_v21, %v895_v28  ;;  %v954_v34 = vcombine.low %v889_v21, %v895_v28 }
 0x22e   : > { %v986_v35 = vcombine.low %v930_v32, %v946_v27  ;;  %v987_v36 = vcombine.high %v930_v32, %v946_v27 }
 0x22f   : > { %v962_v41 = vrot.slane %v954_v34, %v5491_v9  ;;  %v969_v42 = vrot.slane %v955_v33, %v5491_v9  ;;  %v1010_v48 = vrot.slane %v1002_v30, %v5498_v20  ;;  %v1017_v56 = vrot.slane %v1003_v31, %v5498_v20 }
 0x230   : > { %v902_v37 = vpop.permute.xlu1 %901  ;;  %v898_v38 = vpop.permute.xlu0 %897  ;;  %v994_v46 = vrot.slane %v986_v35, %v5498_v20  ;;  %v1001_v47 = vrot.slane %v987_v36, %v5498_v20 }
 0x231   : > { %v970_v39 = vcombine.low %v892_v29, %v898_v38  ;;  %v971_v40 = vcombine.high %v892_v29, %v898_v38 }
 0x233   : > { %v978_v43 = vrot.slane %v970_v39, %v5491_v9  ;;  %v985_v45 = vrot.slane %v971_v40, %v5491_v9 }
 0x234   : > { %v908_v49 = vpop.permute.xlu1 %907  ;;  %v905_v50 = vpop.permute.xlu0 %904 }
 0x235   : > { %v1018_v51 = vcombine.low %v962_v41, %v978_v43  ;;  %v1019_v53 = vcombine.high %v962_v41, %v978_v43  ;;  %v1034_v54 = vcombine.low %v969_v42, %v985_v45  ;;  %v1035_v55 = vcombine.high %v969_v42, %v985_v45 }
 0x236   : > { %v1074_v44 = vcombine.low %v902_v37, %v908_v49  ;;  %v1075_v57 = vcombine.high %v902_v37, %v908_v49  ;;  %v1058_v52 = vcombine.low %v5614_v12, %v905_v50  ;;  %v1059_v1 = vcombine.high %v5614_v12, %v905_v50 }
 0x237   : > { %v1026_v58 = vrot.slane %v1018_v51, %v5498_v20  ;;  %v1033_v59 = vrot.slane %v1019_v53, %v5498_v20  ;;  %v1042_v60 = vrot.slane %v1034_v54, %v5498_v20  ;;  %v1049_v61 = vrot.slane %v1035_v55, %v5498_v20 }
 0x238   : > { %v5658_v62 = vrot.slane %v1074_v44, %v5491_v9  ;;  %v5661_v63 = vrot.slane %v1075_v57, %v5491_v9  ;;  %v5665_v2 = vrot.slane %v1058_v52, %v5491_v9  ;;  %v5704_v3 = vrot.slane %v1059_v1, %v5491_v9  ;;  %v914_v42 = vpop.permute.xlu1 %913  ;;  %v911_v43 = vpop.permute.xlu0 %910 }
 0x239   : > { %v5667_v4 = vcombine.low %v994_v46, %v1026_v58  ;;  %v5669_v5 = vcombine.high %v994_v46, %v1026_v58  ;;  %v5671_v6 = vcombine.low %v1001_v47, %v1033_v59  ;;  %v5673_v7 = vcombine.high %v1001_v47, %v1033_v59 }
 0x23a   : > { %v5675_v8 = vcombine.low %v1010_v48, %v1042_v60  ;;  %v5677_v10 = vcombine.high %v1010_v48, %v1042_v60  ;;  %v5679_v11 = vcombine.low %v1017_v56, %v1049_v61  ;;  %v5681_v13 = vcombine.high %v1017_v56, %v1049_v61 }
 0x23b   : > { %v1211_v12 = vrot.slane %v5667_v4, 7  ;;  %v1214_v14 = vrot.slane %v5669_v5, 7  ;;  %v1217_v15 = vrot.slane %v5671_v6, 7  ;;  %v1220_v16 = vrot.slane %v5673_v7, 7 }
 0x23c   : > { %v1223_v18 = vrot.slane %v5675_v8, 7  ;;  %v1226_v19 = vrot.slane %v5677_v10, 7  ;;  %v1229_v21 = vrot.slane %v5679_v11, 7  ;;  %v1232_v22 = vrot.slane %v5681_v13, 7 }
 0x23d   : > { %v1251_v23 = vsel %vm1210_vm9, %v5667_v4, %v1211_v12  ;;  %v1252_v24 = vsel %vm1210_vm9, %v5669_v5, %v1214_v14  ;;  %v1253_v25 = vsel %vm1210_vm9, %v5671_v6, %v1217_v15  ;;  %v1254_v26 = vsel %vm1210_vm9, %v5673_v7, %v1220_v16 }
 0x23e   : > { %v1255_v27 = vsel %vm1210_vm9, %v5675_v8, %v1223_v18  ;;  %v1256_v28 = vsel %vm1210_vm9, %v5677_v10, %v1226_v19  ;;  %v1257_v29 = vsel %vm1210_vm9, %v5679_v11, %v1229_v21  ;;  %v1258_v30 = vsel %vm1210_vm9, %v5681_v13, %v1232_v22 }
 0x23f   : > { %v1260_v31 = vrot.slane %v5667_v4, 1  ;;  %v1308_v39 = vmul.f32 0.25, %v1251_v23  ;;  %v1310_v40 = vmul.f32 0.25, %v1252_v24  ;;  %v1312_v41 = vmul.f32 0.25, %v1253_v25 }
 0x240   : > { %v1316_v45 = vmul.f32 0.25, %v1255_v27  ;;  %v1318_v46 = vmul.f32 0.25, %v1256_v28  ;;  %v1320_v47 = vmul.f32 0.25, %v1257_v29  ;;  %v1322_v48 = vmul.f32 0.25, %v1258_v30  ;;  %v920_v28 = vpop.permute.xlu1 %919  ;;  %v917_v29 = vpop.permute.xlu0 %916 }
 0x241   : > { %v1314_v49 = vmul.f32 0.25, %v1254_v26  ;;  %v5735_v50 = vmul.f32 0.75, %v5667_v4  ;;  %v5738_v51 = vmul.f32 0.75, %v5669_v5  ;;  %v5741_v53 = vmul.f32 0.75, %v5671_v6 }
 0x242   : > { %v5744_v54 = vmul.f32 0.75, %v5675_v8  ;;  %v5747_v55 = vmul.f32 0.75, %v5677_v10  ;;  %v5750_v56 = vmul.f32 0.75, %v5679_v11  ;;  %v5753_v44 = vmul.f32 0.75, %v5681_v13 }
 0x243   : > { %v1340_v57 = vadd.f32 %v5735_v50, %v1308_v39  ;;  %v5757_v52 = vadd.f32 %v5738_v51, %v1310_v40  ;;  %v5760_v58 = vadd.f32 %v5741_v53, %v1312_v41  ;;  %v1122_v59 = vcombine.low %v5665_v2, %v5658_v62 }
 0x244   : > { %v5765_v60 = vadd.f32 %v5744_v54, %v1316_v45  ;;  %v5768_v61 = vadd.f32 %v5747_v55, %v1318_v46  ;;  %v5771_v1 = vadd.f32 %v5750_v56, %v1320_v47  ;;  %v5774_v23 = vadd.f32 %v5753_v44, %v1322_v48 }
 0x245   : > { %6981 = vst [vmem:[#allocation9_spill] sm:$0xff] %v5757_v52  ;;  %6982 = vst [vmem:[#allocation10_spill] sm:$0xff] %v5760_v58  ;;  %v5777_v24 = vmul.f32 0.75, %v5673_v7  ;;  %v1404_v25 = vcombine.high %v1340_v57, %v1340_v57  ;;  %v1123_v27 = vcombine.high %v5665_v2, %v5658_v62  ;;  %v1130_v46 = vrot.slane %v1122_v59, %v5498_v20 }
 0x246   : > { %6983 = vst [vmem:[#allocation11_spill] sm:$0xff] %v5765_v60  ;;  %6984 = vst [vmem:[#allocation12_spill] sm:$0xff] %v5768_v61  ;;  %v1138_v62 = vcombine.low %v5704_v3, %v5661_v63  ;;  %v1139_v2 = vcombine.high %v5704_v3, %v5661_v63  ;;  %v1106_v47 = vcombine.low %v914_v42, %v920_v28  ;;  %v6994_v4 = vrot.slane %v5679_v11, 1 }
 0x247   : > { %6985 = vst [vmem:[#allocation13_spill] sm:$0xff] %v5771_v1  ;;  %6986 = vst [vmem:[#allocation14_spill] sm:$0xff] %v5774_v23  ;;  %v1107_v48 = vcombine.high %v914_v42, %v920_v28  ;;  %v1090_v30 = vcombine.low %v911_v43, %v917_v29  ;;  %v1091_v39 = vcombine.high %v911_v43, %v917_v29  ;;  %v6993_v1 = vrot.slane %v5677_v10, 1 }
 0x248   : > { %v1137_v40 = vrot.slane %v1123_v27, %v5498_v20  ;;  %v1146_v26 = vrot.slane %v1138_v62, %v5498_v20  ;;  %v1411_v41 = vrot.slane %v1340_v57, %v5531_v0  ;;  %v1418_v45 = vrot.slane %v1404_v25, %v5531_v0 }
 0x249   : > { %v1114_v59 = vrot.slane %v1106_v47, %v5491_v9  ;;  %v1121_v34 = vrot.slane %v1107_v48, %v5491_v9  ;;  %v1098_v38 = vrot.slane %v1090_v30, %v5491_v9  ;;  %v1105_v63 = vrot.slane %v1091_v39, %v5491_v9 }
 0x24a   : > { %v1419_v3 = vcombine.high %v1411_v41, %v1411_v41  ;;  %v1420_v42 = vcombine.high %v1418_v45, %v1418_v45  ;;  %v5807_v43 = vrot.slane %v1411_v41, %v5531_v0  ;;  %v5810_v27 = vrot.slane %v1418_v45, %v5531_v0 }
 0x24b   : > { %v1154_v28 = vcombine.low %v1098_v38, %v1114_v59  ;;  %v1155_v57 = vcombine.high %v1098_v38, %v1114_v59  ;;  %v1170_v29 = vcombine.low %v1105_v63, %v1121_v34  ;;  %v1171_v25 = vcombine.high %v1105_v63, %v1121_v34 }
 0x24c   : > { %6987 = vst [vmem:[#allocation15_spill] sm:$0xff] %v5810_v27  ;;  %v1153_v62 = vrot.slane %v1139_v2, %v5498_v20  ;;  %v5814_v47 = vrot.slane %v1419_v3, %v5531_v0  ;;  %v5817_v30 = vrot.slane %v1420_v42, %v5531_v0  ;;  %v5832_v63 = vadd.f32 %v5777_v24, %v1314_v49 }
 0x24d   : > { %v1162_v41 = vrot.slane %v1154_v28, %v5498_v20  ;;  %v1169_v45 = vrot.slane %v1155_v57, %v5498_v20  ;;  %v1178_v38 = vrot.slane %v1170_v29, %v5498_v20  ;;  %v1185_v34 = vrot.slane %v1171_v25, %v5498_v20 }
 0x24e   : > { %6988 = vst [vmem:[#allocation16_spill] sm:$0xff] %v5817_v30  ;;  %v5836_v48 = vrot.slane %v5757_v52, %v5531_v0 }
 0x24f   : > { %v1186_v3 = vcombine.low %v1130_v46, %v1162_v41  ;;  %v1187_v42 = vcombine.high %v1130_v46, %v1162_v41  ;;  %v1188_v28 = vcombine.low %v1137_v40, %v1169_v45  ;;  %v1189_v57 = vcombine.high %v1137_v40, %v1169_v45 }
 0x250   : > { %v1190_v39 = vcombine.low %v1146_v26, %v1178_v38  ;;  %v1191_v29 = vcombine.high %v1146_v26, %v1178_v38  ;;  %v1192_v37 = vcombine.low %v1153_v62, %v1185_v34  ;;  %v1193_v20 = vcombine.high %v1153_v62, %v1185_v34  ;;  %6989 = vst [vmem:[#allocation17_spill] sm:$0xff] %v5836_v48 }
 0x251   : > { %v1212_v25 = vrot.slane %v1186_v3, 7  ;;  %v1215_v36 = vrot.slane %v1187_v42, 7  ;;  %v1218_v2 = vrot.slane %v1188_v28, 7  ;;  %v1221_v62 = vrot.slane %v1189_v57, 7 }
 0x252   : > { %v1224_v35 = vrot.slane %v1190_v39, 7  ;;  %v1227_v59 = vrot.slane %v1191_v29, 7  ;;  %v1230_v33 = vrot.slane %v1192_v37, 7  ;;  %v1233_v49 = vrot.slane %v1193_v20, 7 }
 0x253   : > { %v1213_v46 = vsel %vm1210_vm9, %v1211_v12, %v1212_v25  ;;  %v1216_v26 = vsel %vm1210_vm9, %v1214_v14, %v1215_v36  ;;  %v1219_v40 = vsel %vm1210_vm9, %v1217_v15, %v1218_v2  ;;  %v1261_v36 = vrot.slane %v1186_v3, 1 }
 0x254   : > { %v1225_v41 = vsel %vm1210_vm9, %v1223_v18, %v1224_v35  ;;  %v1228_v45 = vsel %vm1210_vm9, %v1226_v19, %v1227_v59  ;;  %v1231_v12 = vsel %vm1210_vm9, %v1229_v21, %v1230_v33  ;;  %v1234_v14 = vsel %vm1210_vm9, %v1232_v22, %v1233_v49 }
 0x255   : > { %v1264_v38 = vrot.slane %v1187_v42, 1  ;;  %v1267_v15 = vrot.slane %v1188_v28, 1  ;;  %v1270_v34 = vrot.slane %v1189_v57, 1  ;;  %v1273_v2 = vrot.slane %v1190_v39, 1 }
 0x256   : > { %v1276_v25 = vrot.slane %v1191_v29, 1  ;;  %v1279_v32 = vrot.slane %v1192_v37, 1  ;;  %v1282_v18 = vrot.slane %v1193_v20, 1  ;;  %v1222_v19 = vsel %vm1210_vm9, %v1220_v16, %v1221_v62 }
 0x257   : > { %v1262_v21 = vsel %vm1259_vm10, %v1260_v31, %v1261_v36  ;;  %v6990_v33 = vrot.slane %v5669_v5, 1  ;;  %v6991_v35 = vrot.slane %v5671_v6, 1  ;;  %v6992_v49 = vrot.slane %v5675_v8, 1 }
 0x258   : > { %v1277_v16 = vsel %vm1259_vm10, %v6993_v1, %v1276_v25  ;;  %v1280_v31 = vsel %vm1259_vm10, %v6994_v4, %v1279_v32  ;;  %v6995_v5 = vrot.slane %v5681_v13, 1  ;;  %v6996_v6 = vrot.slane %v5673_v7, 1 }
 0x259   : > { %v1265_v22 = vsel %vm1259_vm10, %v6990_v33, %v1264_v38  ;;  %v1268_v59 = vsel %vm1259_vm10, %v6991_v35, %v1267_v15  ;;  %v1274_v23 = vsel %vm1259_vm10, %v6992_v49, %v1273_v2  ;;  %v1300_v8 = vsel %vm1259_vm10, %v1261_v36, %v1186_v3 }
 0x25a   : > { %v1283_v62 = vsel %vm1259_vm10, %v6995_v5, %v1282_v18  ;;  %v5886_v33 = vsel %vm1259_vm10, %v6996_v6, %v1270_v34  ;;  %v1301_v35 = vsel %vm1259_vm10, %v1264_v38, %v1187_v42  ;;  %v1302_v10 = vsel %vm1259_vm10, %v1267_v15, %v1188_v28 }
 0x25b   : > { %v1304_v1 = vsel %vm1259_vm10, %v1273_v2, %v1190_v39  ;;  %v1305_v11 = vsel %vm1259_vm10, %v1276_v25, %v1191_v29  ;;  %v1306_v49 = vsel %vm1259_vm10, %v1279_v32, %v1192_v37  ;;  %v1307_v13 = vsel %vm1259_vm10, %v1282_v18, %v1193_v20 }
 0x25c   : > { %v1303_v4 = vsel %vm1259_vm10, %v1270_v34, %v1189_v57  ;;  %v1309_v7 = vmul.f32 0.25, %v1213_v46  ;;  %v1311_v5 = vmul.f32 0.25, %v1216_v26  ;;  %v1313_v6 = vmul.f32 0.25, %v1219_v40 }
 0x25d   : > { %v1317_v61 = vmul.f32 0.25, %v1225_v41  ;;  %v1319_v58 = vmul.f32 0.25, %v1228_v45  ;;  %v1321_v36 = vmul.f32 0.25, %v1231_v12  ;;  %v1323_v60 = vmul.f32 0.25, %v1234_v14 }
 0x25e   : > { %v1315_v38 = vmul.f32 0.25, %v1222_v19  ;;  %v1325_v48 = vmul.f32 0.75, %v1186_v3  ;;  %v1327_v15 = vmul.f32 0.75, %v1187_v42  ;;  %v1329_v52 = vmul.f32 0.75, %v1188_v28 }
 0x25f   : > { %v1333_v2 = vmul.f32 0.75, %v1190_v39  ;;  %v1335_v9 = vmul.f32 0.75, %v1191_v29  ;;  %v1337_v25 = vmul.f32 0.75, %v1192_v37  ;;  %v1339_v30 = vmul.f32 0.75, %v1193_v20 }
 0x260   : > { %v1331_v32 = vmul.f32 0.75, %v1189_v57  ;;  %v1341_v27 = vadd.f32 %v1325_v48, %v1309_v7  ;;  %v5896_v18 = vadd.f32 %v1327_v15, %v1311_v5  ;;  %v5898_v34 = vadd.f32 %v1329_v52, %v1313_v6 }
 0x261   : > { %v5900_v46 = vadd.f32 %v1333_v2, %v1317_v61  ;;  %v5902_v26 = vadd.f32 %v1335_v9, %v1319_v58  ;;  %v5904_v40 = vadd.f32 %v1337_v25, %v1321_v36  ;;  %v5906_v41 = vadd.f32 %v1339_v30, %v1323_v60 }
 0x262   : > { %v5908_v3 = vadd.f32 %v1331_v32, %v1315_v38  ;;  %v1356_v39 = vmul.f32 0.25, %v1262_v21  ;;  %v1357_v42 = vmul.f32 0.25, %v1300_v8  ;;  %v1358_v37 = vmul.f32 0.25, %v1265_v22 }
 0x263   : > { %6997 = vst [vmem:[#allocation18_spill] sm:$0xff] %v5904_v40  ;;  %6998 = vst [vmem:[#allocation19_spill] sm:$0xff] %v5906_v41  ;;  %v1359_v28 = vmul.f32 0.25, %v1301_v35  ;;  %v1360_v57 = vmul.f32 0.25, %v1268_v59  ;;  %v1361_v29 = vmul.f32 0.25, %v1302_v10  ;;  %v1364_v20 = vmul.f32 0.25, %v1274_v23 }
 0x264   : > { %v1365_v45 = vmul.f32 0.25, %v1304_v1  ;;  %v1366_v12 = vmul.f32 0.25, %v1277_v16  ;;  %v1367_v14 = vmul.f32 0.25, %v1305_v11  ;;  %v1368_v61 = vmul.f32 0.25, %v1280_v31 }
 0x265   : > { %v1363_v19 = vmul.f32 0.25, %v1303_v4  ;;  %v1369_v58 = vmul.f32 0.25, %v1306_v49  ;;  %v1370_v7 = vmul.f32 0.25, %v1283_v62  ;;  %v1371_v5 = vmul.f32 0.25, %v1307_v13 }
 0x266   : > { %v5911_v60 = vadd.f32 %v1356_v39, %v5735_v50  ;;  %v1373_v6 = vadd.f32 %v1357_v42, %v1325_v48  ;;  %v5914_v21 = vadd.f32 %v1358_v37, %v5738_v51  ;;  %v5917_v22 = vadd.f32 %v1360_v57, %v5741_v53 }
 0x267   : > { %v1375_v59 = vadd.f32 %v1359_v28, %v1327_v15  ;;  %v1377_v23 = vadd.f32 %v1361_v29, %v1329_v52  ;;  %v5920_v16 = vadd.f32 %v1364_v20, %v5744_v54  ;;  %v1381_v31 = vadd.f32 %v1365_v45, %v1333_v2 }
 0x268   : > { %v5923_v8 = vadd.f32 %v1366_v12, %v5747_v55  ;;  %v1383_v62 = vadd.f32 %v1367_v14, %v1335_v9  ;;  %v5926_v50 = vadd.f32 %v1368_v61, %v5750_v56  ;;  %v1385_v48 = vadd.f32 %v1369_v58, %v1337_v25 }
 0x269   : > { %v5929_v51 = vadd.f32 %v1370_v7, %v5753_v44  ;;  %v1387_v35 = vadd.f32 %v1371_v5, %v1339_v30  ;;  %v1453_v53 = vcombine.high %v1341_v27, %v1341_v27  ;;  %v5932_v10 = vrot.slane %v1341_v27, %v5531_v0 }
 0x26a   : > { %6999 = vst [vmem:[#allocation20_spill] sm:$0xff] %v5926_v50  ;;  %v1379_v52 = vadd.f32 %v1363_v19, %v1331_v32  ;;  %v5938_v55 = vrot.slane %v5896_v18, %v5531_v0  ;;  %v5953_v30 = vrot.slane %v5898_v34, %v5531_v0  ;;  %v5959_v11 = vrot.slane %v5908_v3, %v5531_v0 }
 0x26b   : > { %7000 = vst [vmem:[#allocation21_spill] sm:$0xff] %v5929_v51  ;;  %v5943_v56 = vrot.slane %v1453_v53, %v5531_v0  ;;  %v5949_v27 = vrot.slane %v5932_v10, %v5531_v0  ;;  %v5965_v13 = vrot.slane %v5900_v46, %v5531_v0  ;;  %v5973_v38 = vrot.slane %v5902_v26, %v5531_v0  ;;  %v7010_v51 = vld [vmem:[#allocation15_spill] sm:$0xff] }
 0x26c   : > { %v5979_v2 = vrot.slane %v5904_v40, %v5531_v0  ;;  %v2381_v32 = vcombine.high %v1373_v6, %v1373_v6  ;;  %v2388_v39 = vrot.slane %v1373_v6, %v5531_v0  ;;  %v2479_v42 = vcombine.high %v1375_v59, %v1375_v59 }
 0x26d   : > { %v5985_v37 = vrot.slane %v1375_v59, %v5531_v0  ;;  %v2577_v28 = vcombine.high %v1377_v23, %v1377_v23  ;;  %v5988_v57 = vrot.slane %v1377_v23, %v5531_v0  ;;  %v5992_v29 = vrot.slane %v5906_v41, %v5531_v0 }
 0x26e   : > { %7001 = vst [vmem:[#allocation22_spill] sm:$0xff] %v5979_v2  ;;  %v5995_v20 = vrot.slane %v2381_v32, %v5531_v0  ;;  %v2396_v45 = vcombine.high %v2388_v39, %v2388_v39  ;;  %v5998_v12 = vrot.slane %v2388_v39, %v5531_v0  ;;  %v6001_v14 = vrot.slane %v2479_v42, %v5531_v0 }
 0x26f   : > { %7002 = vst [vmem:[#allocation23_spill] sm:$0xff] %v5992_v29  ;;  %v6006_v19 = vrot.slane %v2577_v28, %v5531_v0  ;;  %v2675_v58 = vcombine.high %v1379_v52, %v1379_v52  ;;  %v6022_v53 = vrot.slane %v1379_v52, %v5531_v0  ;;  %v2773_v32 = vcombine.high %v1381_v31, %v1381_v31 }
 0x270   : > { %v6012_v5 = vrot.slane %v5995_v20, %v5531_v0  ;;  %v6015_v6 = vrot.slane %v2396_v45, %v5531_v0  ;;  %v6025_v39 = vrot.slane %v1381_v31, %v5531_v0  ;;  %v2871_v42 = vcombine.high %v1383_v62, %v1383_v62 }
 0x271   : > { %v6028_v28 = vrot.slane %v1383_v62, %v5531_v0  ;;  %v2969_v25 = vcombine.high %v1385_v48, %v1385_v48  ;;  %v6031_v45 = vrot.slane %v1385_v48, %v5531_v0  ;;  %v6034_v15 = vrot.slane %v2675_v58, %v5531_v0 }
 0x272   : > { %v6039_v52 = vrot.slane %v2773_v32, %v5531_v0  ;;  %v3067_v59 = vcombine.high %v1387_v35, %v1387_v35  ;;  %v6044_v62 = vrot.slane %v2871_v42, %v5531_v0  ;;  %v6054_v49 = vrot.slane %v1387_v35, %v5531_v0 }
 0x273   : > { %7003 = vst [vmem:[#allocation24_spill] sm:$0xff] %v6028_v28  ;;  %7004 = vst [vmem:[#allocation25_spill] sm:$0xff] %v6031_v45  ;;  %v6049_v9 = vrot.slane %v2969_v25, %v5531_v0  ;;  %v2332_v32 = vcombine.high %v5911_v60, %v5911_v60  ;;  %v2339_v31 = vrot.slane %v5911_v60, %v5531_v0  ;;  %v1362_v48 = vmul.f32 0.25, %v5886_v33 }
 0x274   : > { %7005 = vst [vmem:[#allocation26_spill] sm:$0xff] %v6044_v62  ;;  %7007 = vst [vmem:[#allocation28_spill] sm:$0xff] %v6054_v49  ;;  %v6061_v42 = vrot.slane %v3067_v59, %v5531_v0  ;;  %v1698_v25 = vcombine.high %v5832_v63, %v5832_v63  ;;  %v1705_v58 = vrot.slane %v5832_v63, %v5531_v0  ;;  %v7012_v49 = vld [vmem:[#allocation16_spill] sm:$0xff] }
 0x275   : > { %7006 = vst [vmem:[#allocation27_spill] sm:$0xff] %v6049_v9  ;;  %v2346_v35 = vrot.slane %v2332_v32, %v5531_v0  ;;  %v2347_v61 = vcombine.high %v2339_v31, %v2339_v31  ;;  %v2355_v54 = vrot.slane %v2339_v31, %v5531_v0  ;;  %v6072_v36 = vrot.slane %v5943_v56, %v5531_v0 }
 0x276   : > { %7008 = vst [vmem:[#allocation29_spill] sm:$0xff] %v6061_v42  ;;  %v1378_v60 = vadd.f32 %v1362_v48, %v5777_v24  ;;  %v1712_v59 = vrot.slane %v1698_v25, %v5531_v0  ;;  %v1713_v33 = vcombine.high %v1705_v58, %v1705_v58  ;;  %v6077_v1 = vrot.slane %v1705_v58, %v5531_v0 }
 0x277   : > { %v2348_v23 = vcombine.high %v2346_v35, %v2346_v35  ;;  %v2362_v63 = vrot.slane %v2346_v35, %v5531_v0  ;;  %v2369_v32 = vrot.slane %v2347_v61, %v5531_v0  ;;  %v2377_v7 = vcombine.high %v2355_v54, %v2355_v54 }
 0x278   : > { %v3119_v31 = vrot.slane %v2355_v54, %v5546_v17  ;;  %v1714_v4 = vcombine.high %v1712_v59, %v1712_v59  ;;  %v6083_v44 = vrot.slane %v1712_v59, %v5531_v0  ;;  %v6086_v24 = vrot.slane %v1713_v33, %v5531_v0 }
 0x279   : > { %v2376_v48 = vrot.slane %v2348_v23, %v5531_v0  ;;  %v2378_v25 = vcombine.high %v2362_v63, %v2362_v63  ;;  %v2379_v58 = vcombine.high %v2369_v32, %v2369_v32  ;;  %v3123_v42 = vrot.slane %v2369_v32, %v5546_v17 }
 0x27a   : > { %v3127_v35 = vrot.slane %v2377_v7, %v5546_v17  ;;  %v3135_v61 = vrot.slane %v2362_v63, %v5546_v17  ;;  %v3756_v54 = vsel %vm1210_vm9, %v5807_v43, %v3119_v31  ;;  %v6095_v29 = vrot.slane %v1714_v4, %v5531_v0 }
 0x27b   : > { %v2380_v59 = vcombine.high %v2376_v48, %v2376_v48  ;;  %v3131_v33 = vrot.slane %v2379_v58, %v5546_v17  ;;  %v3139_v41 = vrot.slane %v2376_v48, %v5546_v17  ;;  %v3143_v23 = vrot.slane %v2378_v25, %v5546_v17 }
 0x27c   : > { %v3757_v32 = vsel %vm1210_vm9, %v5814_v47, %v3123_v42  ;;  %v7009_v7 = vcombine.high %v5807_v43, %v5807_v43  ;;  %v3760_v31 = vsel %vm1210_vm9, %v7010_v51, %v3135_v61  ;;  %v1743_v4 = vcombine.high %v6077_v1, %v6077_v1 }
 0x27d   : > { %v3147_v58 = vrot.slane %v2380_v59, %v5546_v17  ;;  %v7011_v48 = vcombine.high %v5814_v47, %v5814_v47  ;;  %v3761_v42 = vsel %vm1210_vm9, %v7012_v49, %v3139_v41  ;;  %v7013_v43 = vcombine.high %v7010_v51, %v7010_v51 }
 0x27e   : > { %v3758_v63 = vsel %vm1210_vm9, %v7009_v7, %v3127_v35  ;;  %v4012_v7 = vcombine.low %v3756_v54, %v3757_v32  ;;  %v4029_v45 = vcombine.low %v3760_v31, %v3761_v42  ;;  %v1744_v9 = vcombine.high %v6083_v44, %v6083_v44 }
 0x27f   : > { %v3759_v25 = vsel %vm1210_vm9, %v7011_v48, %v3131_v33  ;;  %v3762_v35 = vsel %vm1210_vm9, %v7013_v43, %v3143_v23  ;;  %v7014_v59 = vcombine.high %v7012_v49, %v7012_v49  ;;  %v1745_v33 = vcombine.high %v6086_v24, %v6086_v24  ;;  %v7015_v48 = vld [vmem:[#allocation8_spill] sm:$0xff] }
 0x280   : > { %v4013_v61 = vcombine.low %v3758_v63, %v3759_v25  ;;  %v1746_v41 = vcombine.high %v6095_v29, %v6095_v29  ;;  %v2626_v51 = vcombine.high %v1378_v60, %v1378_v60  ;;  %v4020_v23 = vrot.slane %v4012_v7, %v7015_v48 }
 0x281   : > { %v3763_v47 = vsel %vm1210_vm9, %v7014_v59, %v3147_v58  ;;  %v4037_v63 = vrot.slane %v4029_v45, %v7015_v48  ;;  %v2633_v31 = vrot.slane %v1378_v60, %v5531_v0  ;;  %v7016_v58 = vcombine.high %v5932_v10, %v5932_v10 }
 0x282   : > { %v4027_v54 = vrot.slane %v4013_v61, %v7015_v48  ;;  %v4030_v32 = vcombine.low %v3762_v35, %v3763_v47  ;;  %v2640_v49 = vrot.slane %v2626_v51, %v5531_v0  ;;  %v7017_v42 = vcombine.high %v5943_v56, %v5943_v56 }
 0x283   : > { %v6140_v25 = vrot.slane %v7016_v58, %v5531_v0  ;;  %v1498_v45 = vcombine.high %v5949_v27, %v5949_v27  ;;  %v1499_v60 = vcombine.high %v6072_v36, %v6072_v36  ;;  %v2641_v61 = vcombine.high %v2633_v31, %v2633_v31 }
 0x284   : > { %v6146_v43 = vrot.slane %v7017_v42, %v5531_v0  ;;  %v4028_v7 = vcombine.low %v4020_v23, %v4027_v54  ;;  %v4044_v35 = vrot.slane %v4030_v32, %v7015_v48  ;;  %v2642_v59 = vcombine.high %v2640_v49, %v2640_v49 }
 0x285   : > { %v2649_v10 = vrot.slane %v2633_v31, %v5531_v0  ;;  %v2656_v47 = vrot.slane %v2640_v49, %v5531_v0  ;;  %v1500_v56 = vcombine.high %v6140_v25, %v6140_v25  ;;  %v7018_v54 = vcombine.high %v5995_v20, %v5995_v20 }
 0x286   : > { %v4045_v51 = vcombine.low %v4037_v63, %v4044_v35  ;;  %v1501_v23 = vcombine.high %v6146_v43, %v6146_v43  ;;  %v2663_v58 = vrot.slane %v2641_v61, %v5531_v0  ;;  %v2670_v42 = vrot.slane %v2642_v59, %v5531_v0 }
 0x287   : > { %v2425_v32 = vrot.slane %v7018_v54, %v5531_v0  ;;  %v2671_v2 = vcombine.high %v2649_v10, %v2649_v10  ;;  %v2672_v31 = vcombine.high %v2656_v47, %v2656_v47  ;;  %v3311_v63 = vrot.slane %v2649_v10, %v5546_v17 }
 0x288   : > { %v4588_v40 = vpack.c.bf16 %v4045_v51, %v4028_v7  ;;  %v3327_v49 = vrot.slane %v2656_v47, %v5546_v17  ;;  %v2427_v35 = vcombine.high %v6012_v5, %v6012_v5  ;;  %v2673_v50 = vcombine.high %v2663_v58, %v2663_v58 }
 0x289   : > { %v2674_v28 = vcombine.high %v2670_v42, %v2670_v42  ;;  %v3315_v62 = vrot.slane %v2663_v58, %v5546_v17  ;;  %v3319_v20 = vrot.slane %v2671_v2, %v5546_v17  ;;  %v3331_v61 = vrot.slane %v2670_v42, %v5546_v17 }
 0x28a   : > { %5095 = vmatprep.mubr.msk.bf16.mxu0 %vm620_vm0, %v4588_v40  ;;  %v3335_v59 = vrot.slane %v2672_v31, %v5546_v17  ;;  %v3804_v7 = vsel %vm1210_vm9, %v6077_v1, %v3311_v63  ;;  %v3808_v10 = vsel %vm1210_vm9, %v6083_v44, %v3327_v49  ;;  %v3323_v47 = vrot.slane %v2673_v50, %v5546_v17 }
 0x28b   : > { %v3339_v51 = vrot.slane %v2674_v28, %v5546_v17  ;;  %v3805_v54 = vsel %vm1210_vm9, %v6086_v24, %v3315_v62  ;;  %v3806_v2 = vsel %vm1210_vm9, %v1743_v4, %v3319_v20  ;;  %v3809_v40 = vsel %vm1210_vm9, %v6095_v29, %v3331_v61 }
 0x28c   : > { %v3810_v58 = vsel %vm1210_vm9, %v1744_v9, %v3335_v59  ;;  %v4216_v42 = vcombine.low %v3804_v7, %v3805_v54  ;;  %v2428_v1 = vcombine.high %v6015_v6, %v6015_v6  ;;  %v3807_v44 = vsel %vm1210_vm9, %v1745_v33, %v3323_v47 }
 0x28d   : > { %v3811_v50 = vsel %vm1210_vm9, %v1746_v41, %v3339_v51  ;;  %v4233_v31 = vcombine.low %v3808_v10, %v3809_v40  ;;  %v2429_v28 = vcombine.high %v2425_v32, %v2425_v32  ;;  %v4217_v63 = vcombine.low %v3806_v2, %v3807_v44 }
 0x28e   : > { %v4224_v62 = vrot.slane %v4216_v42, %v7015_v48  ;;  %v4234_v24 = vcombine.low %v3810_v58, %v3811_v50  ;;  %v3151_v4 = vrot.slane %v5998_v12, %v5546_v17  ;;  %v3155_v9 = vrot.slane %v6015_v6, %v5546_v17 }
 0x28f   : > { %v4241_v29 = vrot.slane %v4233_v31, %v7015_v48  ;;  %v7019_v33 = vcombine.high %v5998_v12, %v5998_v12  ;;  %v3163_v41 = vrot.slane %v2428_v1, %v5546_v17  ;;  %v4231_v20 = vrot.slane %v4217_v63, %v7015_v48 }
 0x290   : > { %v4248_v61 = vrot.slane %v4234_v24, %v7015_v48  ;;  %v3167_v59 = vrot.slane %v6012_v5, %v5546_v17  ;;  %v3171_v7 = vrot.slane %v2425_v32, %v5546_v17  ;;  %v3175_v10 = vrot.slane %v2427_v35, %v5546_v17 }
 0x291   : > { %v3159_v49 = vrot.slane %v7019_v33, %v5546_v17  ;;  %v3179_v6 = vrot.slane %v2429_v28, %v5546_v17  ;;  %v3764_v47 = vsel %vm1210_vm9, %v5949_v27, %v3151_v4  ;;  %v3765_v12 = vsel %vm1210_vm9, %v6140_v25, %v3155_v9 }
 0x292   : > { %v4232_v51 = vcombine.low %v4224_v62, %v4231_v20  ;;  %v4249_v54 = vcombine.low %v4241_v29, %v4248_v61  ;;  %v3767_v40 = vsel %vm1210_vm9, %v1500_v56, %v3163_v41  ;;  %v3768_v5 = vsel %vm1210_vm9, %v6072_v36, %v3167_v59 }
 0x293   : > { %v3766_v2 = vsel %vm1210_vm9, %v1498_v45, %v3159_v49  ;;  %v3769_v32 = vsel %vm1210_vm9, %v6146_v43, %v3171_v7  ;;  %v3770_v35 = vsel %vm1210_vm9, %v1499_v60, %v3175_v10  ;;  %v3771_v58 = vsel %vm1210_vm9, %v1501_v23, %v3179_v6 }
 0x294   : > { %v4594_v27 = vpack.c.bf16 %v4249_v54, %v4232_v51  ;;  %v4046_v42 = vcombine.low %v3764_v47, %v3765_v12  ;;  %v4047_v1 = vcombine.low %v3766_v2, %v3767_v40  ;;  %v4063_v25 = vcombine.low %v3768_v5, %v3769_v32 }
 0x295   : > { %v4064_v44 = vcombine.low %v3770_v35, %v3771_v58  ;;  %v7020_v45 = vcombine.high %v5908_v3, %v5908_v3  ;;  %v1762_v36 = vcombine.high %v5959_v11, %v5959_v11  ;;  %v1770_v43 = vrot.slane %v5959_v11, %v5531_v0 }
 0x296   : > { %5107 = vmatprep.mubr.msk.bf16.mxu1 %vm620_vm0, %v4594_v27  ;;  %v4054_v60 = vrot.slane %v4046_v42, %v7015_v48  ;;  %v4061_v23 = vrot.slane %v4047_v1, %v7015_v48  ;;  %v4071_v50 = vrot.slane %v4063_v25, %v7015_v48  ;;  %v2691_v31 = vcombine.high %v6034_v15, %v6034_v15 }
 0x297   : > { %v1761_v56 = vrot.slane %v7020_v45, %v5531_v0  ;;  %v4078_v3 = vrot.slane %v4064_v44, %v7015_v48  ;;  %v1784_v62 = vrot.slane %v1762_v36, %v5531_v0  ;;  %v1792_v11 = vcombine.high %v1770_v43, %v1770_v43 }
 0x298   : > { %v4062_v24 = vcombine.low %v4054_v60, %v4061_v23  ;;  %v2698_v4 = vrot.slane %v6022_v53, %v5531_v0  ;;  %v2705_v29 = vrot.slane %v6034_v15, %v5531_v0  ;;  %v7021_v20 = vcombine.high %v6022_v53, %v6022_v53 }
 0x299   : > { %v1763_v28 = vcombine.high %v1761_v56, %v1761_v56  ;;  %v1777_v63 = vrot.slane %v1761_v56, %v5531_v0  ;;  %v4079_v9 = vcombine.low %v4071_v50, %v4078_v3  ;;  %v1794_v41 = vcombine.high %v1784_v62, %v1784_v62  ;;  %v7022_v56 = vld [vmem:[#allocation9_spill] sm:$0xff] }
 0x29a   : > { %v2712_v61 = vrot.slane %v7021_v20, %v5531_v0  ;;  %v2719_v59 = vrot.slane %v2691_v31, %v5531_v0  ;;  %v2720_v7 = vcombine.high %v2698_v4, %v2698_v4  ;;  %v2721_v10 = vcombine.high %v2705_v29, %v2705_v29  ;;  %v7024_v31 = vld [vmem:[#allocation17_spill] sm:$0xff] }
 0x29b   : > { %v1791_v33 = vrot.slane %v1763_v28, %v5531_v0  ;;  %v1793_v49 = vcombine.high %v1777_v63, %v1777_v63  ;;  %v4589_v6 = vpack.c.bf16 %v4079_v9, %v4062_v24  ;;  %v3343_v12 = vrot.slane %v2698_v4, %v5546_v17 }
 0x29c   : > { %v3359_v15 = vrot.slane %v2705_v29, %v5546_v17  ;;  %v2722_v51 = vcombine.high %v2712_v61, %v2712_v61  ;;  %v2723_v54 = vcombine.high %v2719_v59, %v2719_v59  ;;  %v3347_v2 = vrot.slane %v2712_v61, %v5546_v17 }
 0x29d   : > { %v1795_v47 = vcombine.high %v1791_v33, %v1791_v33  ;;  %v3351_v40 = vrot.slane %v2720_v7, %v5546_v17  ;;  %5096 = vmatmul.mubr.msk.bf16.vlgmr.msra.gmra.mrb[4].mxu0 %vm620_vm0, %v4589_v6  ;;  %v3363_v53 = vrot.slane %v2719_v59, %v5546_v17  ;;  %v3367_v5 = vrot.slane %v2721_v10, %v5546_v17 }
 0x29e   : > { %v3812_v32 = vsel %vm1210_vm9, %v1770_v43, %v3343_v12  ;;  %v3816_v35 = vsel %vm1210_vm9, %v1777_v63, %v3359_v15  ;;  %v3355_v58 = vrot.slane %v2722_v51, %v5546_v17  ;;  %v3371_v27 = vrot.slane %v2723_v54, %v5546_v17 }
 0x29f   : > { %v3813_v42 = vsel %vm1210_vm9, %v1784_v62, %v3347_v2  ;;  %v3814_v1 = vsel %vm1210_vm9, %v1792_v11, %v3351_v40  ;;  %v3817_v25 = vsel %vm1210_vm9, %v1791_v33, %v3363_v53  ;;  %v3818_v44 = vsel %vm1210_vm9, %v1793_v49, %v3367_v5  ;;  %v7025_v2 = vld [vmem:[#allocation11_spill] sm:$0xff] }
 0x2a0   : > { %v4250_v45 = vcombine.low %v3812_v32, %v3813_v42  ;;  %v7023_v36 = vcombine.high %v7022_v56, %v7022_v56  ;;  %v3815_v60 = vsel %vm1210_vm9, %v1794_v41, %v3355_v58  ;;  %v3819_v23 = vsel %vm1210_vm9, %v1795_v47, %v3371_v27 }
 0x2a1   : > { %v4267_v50 = vcombine.low %v3816_v35, %v3817_v25  ;;  %v1517_v3 = vcombine.high %v7024_v31, %v7024_v31  ;;  %v4251_v28 = vcombine.low %v3814_v1, %v3815_v60  ;;  %v4268_v62 = vcombine.low %v3818_v44, %v3819_v23 }
 0x2a2   : > { %v1516_v43 = vrot.slane %v7023_v36, %v5531_v0  ;;  %v4258_v63 = vrot.slane %v4250_v45, %v7015_v48  ;;  %v1525_v4 = vrot.slane %v7024_v31, %v5531_v0  ;;  %v2430_v20 = vcombine.high %v5914_v21, %v5914_v21 }
 0x2a3   : > { %v4275_v11 = vrot.slane %v4267_v50, %v7015_v48  ;;  %v1539_v9 = vrot.slane %v1517_v3, %v5531_v0  ;;  %v4265_v33 = vrot.slane %v4251_v28, %v7015_v48  ;;  %v4282_v49 = vrot.slane %v4268_v62, %v7015_v48 }
 0x2a4   : > { %v1518_v24 = vcombine.high %v1516_v43, %v1516_v43  ;;  %v1532_v29 = vrot.slane %v1516_v43, %v5531_v0  ;;  %v1547_v61 = vcombine.high %v1525_v4, %v1525_v4  ;;  %v2437_v10 = vrot.slane %v5914_v21, %v5531_v0 }
 0x2a5   : > { %v1549_v7 = vcombine.high %v1539_v9, %v1539_v9  ;;  %v4266_v6 = vcombine.low %v4258_v63, %v4265_v33  ;;  %v4283_v47 = vcombine.low %v4275_v11, %v4282_v49  ;;  %v2444_v15 = vrot.slane %v2430_v20, %v5531_v0 }
 0x2a6   : > { %v1546_v41 = vrot.slane %v1518_v24, %v5531_v0  ;;  %v1548_v59 = vcombine.high %v1532_v29, %v1532_v29  ;;  %v2445_v51 = vcombine.high %v2437_v10, %v2437_v10  ;;  %v2453_v54 = vrot.slane %v2437_v10, %v5531_v0 }
 0x2a7   : > { %v1803_v40 = vrot.slane %v7025_v2, %v5531_v0  ;;  %v7026_v53 = vcombine.high %v7025_v2, %v7025_v2  ;;  %v4595_v32 = vpack.c.bf16 %v4283_v47, %v4266_v6  ;;  %v2446_v35 = vcombine.high %v2444_v15, %v2444_v15 }
 0x2a8   : > { %v1550_v12 = vcombine.high %v1546_v41, %v1546_v41  ;;  %v2460_v21 = vrot.slane %v2444_v15, %v5531_v0  ;;  %v2724_v58 = vcombine.high %v5920_v16, %v5920_v16  ;;  %v2467_v27 = vrot.slane %v2445_v51, %v5531_v0 }
 0x2a9   : > { %v1810_v5 = vrot.slane %v7026_v53, %v5531_v0  ;;  %v2475_v42 = vcombine.high %v2453_v54, %v2453_v54  ;;  %v3183_v1 = vrot.slane %v2453_v54, %v5546_v17  ;;  %v1811_v25 = vcombine.high %v1803_v40, %v1803_v40  ;;  %5108 = vmatmul.mubr.msk.bf16.vlgmr.msra.gmra.mrb[0].mxu1 %vm620_vm0, %v4595_v32 }
 0x2aa   : > { %v2474_v44 = vrot.slane %v2446_v35, %v5531_v0  ;;  %v2476_v45 = vcombine.high %v2460_v21, %v2460_v21  ;;  %v3199_v56 = vrot.slane %v2460_v21, %v5546_v17  ;;  %v2477_v43 = vcombine.high %v2467_v27, %v2467_v27 }
 0x2ab   : > { %v1812_v36 = vcombine.high %v1810_v5, %v1810_v5  ;;  %v3187_v60 = vrot.slane %v2467_v27, %v5546_v17  ;;  %v3191_v23 = vrot.slane %v2475_v42, %v5546_v17  ;;  %v3772_v50 = vsel %vm1210_vm9, %v1525_v4, %v3183_v1 }
 0x2ac   : > { %v2478_v31 = vcombine.high %v2474_v44, %v2474_v44  ;;  %v3203_v3 = vrot.slane %v2474_v44, %v5546_v17  ;;  %v3207_v28 = vrot.slane %v2476_v45, %v5546_v17  ;;  %v3776_v63 = vsel %vm1210_vm9, %v1532_v29, %v3199_v56 }
 0x2ad   : > { %v3195_v62 = vrot.slane %v2477_v43, %v5546_v17  ;;  %v3773_v24 = vsel %vm1210_vm9, %v1539_v9, %v3187_v60  ;;  %v3774_v11 = vsel %vm1210_vm9, %v1547_v61, %v3191_v23  ;;  %v1819_v33 = vrot.slane %v1803_v40, %v5531_v0 }
 0x2ae   : > { %v3211_v49 = vrot.slane %v2478_v31, %v5546_v17  ;;  %v3777_v20 = vsel %vm1210_vm9, %v1546_v41, %v3203_v3  ;;  %v3778_v4 = vsel %vm1210_vm9, %v1548_v59, %v3207_v28  ;;  %v4080_v10 = vcombine.low %v3772_v50, %v3773_v24 }
 0x2af   : > { %v3775_v6 = vsel %vm1210_vm9, %v1549_v7, %v3195_v62  ;;  %v4097_v47 = vcombine.low %v3776_v63, %v3777_v20  ;;  %v1826_v29 = vrot.slane %v1810_v5, %v5531_v0  ;;  %v1833_v15 = vrot.slane %v1811_v25, %v5531_v0 }
 0x2b0   : > { %v3779_v9 = vsel %vm1210_vm9, %v1550_v12, %v3211_v49  ;;  %v4081_v51 = vcombine.low %v3774_v11, %v3775_v6  ;;  %v4088_v61 = vrot.slane %v4080_v10, %v7015_v48  ;;  %v1840_v54 = vrot.slane %v1812_v36, %v5531_v0 }
 0x2b1   : > { %v4098_v2 = vcombine.low %v3778_v4, %v3779_v9  ;;  %v4105_v41 = vrot.slane %v4097_v47, %v7015_v48  ;;  %v1841_v40 = vcombine.high %v1819_v33, %v1819_v33  ;;  %v1842_v59 = vcombine.high %v1826_v29, %v1826_v29 }
 0x2b2   : > { %v4095_v53 = vrot.slane %v4081_v51, %v7015_v48  ;;  %v1843_v7 = vcombine.high %v1833_v15, %v1833_v15  ;;  %v1844_v32 = vcombine.high %v1840_v54, %v1840_v54  ;;  %v2731_v5 = vrot.slane %v5920_v16, %v5531_v0 }
 0x2b3   : > { %v4112_v35 = vrot.slane %v4098_v2, %v7015_v48  ;;  %v2738_v12 = vrot.slane %v2724_v58, %v5531_v0  ;;  %v7027_v21 = vcombine.high %v5896_v18, %v5896_v18  ;;  %v1566_v42 = vcombine.high %v5938_v55, %v5938_v55 }
 0x2b4   : > { %v4096_v1 = vcombine.low %v4088_v61, %v4095_v53  ;;  %v2739_v25 = vcombine.high %v2731_v5, %v2731_v5  ;;  %v2747_v44 = vrot.slane %v2731_v5, %v5531_v0  ;;  %v6333_v45 = vrot.slane %v5938_v55, %v5531_v0 }
 0x2b5   : > { %v1565_v27 = vrot.slane %v7027_v21, %v5531_v0  ;;  %v4113_v16 = vcombine.low %v4105_v41, %v4112_v35  ;;  %v2740_v56 = vcombine.high %v2738_v12, %v2738_v12  ;;  %v2754_v58 = vrot.slane %v2738_v12, %v5531_v0 }
 0x2b6   : > { %v2761_v43 = vrot.slane %v2739_v25, %v5531_v0  ;;  %v2769_v18 = vcombine.high %v2747_v44, %v2747_v44  ;;  %v3375_v60 = vrot.slane %v2747_v44, %v5546_v17  ;;  %v1588_v9 = vrot.slane %v1566_v42, %v5531_v0 }
 0x2b7   : > { %v1567_v36 = vcombine.high %v1565_v27, %v1565_v27  ;;  %v6339_v23 = vrot.slane %v1565_v27, %v5531_v0  ;;  %v4590_v50 = vpack.c.bf16 %v4113_v16, %v4096_v1  ;;  %v2768_v31 = vrot.slane %v2740_v56, %v5531_v0 }
 0x2b8   : > { %v2770_v3 = vcombine.high %v2754_v58, %v2754_v58  ;;  %v3391_v55 = vrot.slane %v2754_v58, %v5546_v17  ;;  %v2771_v28 = vcombine.high %v2761_v43, %v2761_v43  ;;  %v3379_v63 = vrot.slane %v2761_v43, %v5546_v17 }
 0x2b9   : > { %v3383_v62 = vrot.slane %v2769_v18, %v5546_v17  ;;  %v3820_v24 = vsel %vm1210_vm9, %v1819_v33, %v3375_v60  ;;  %5099 = vmatprep.mubr.msk.bf16.mxu0 %vm620_vm0, %v4590_v50  ;;  %v2772_v11 = vcombine.high %v2768_v31, %v2768_v31  ;;  %v3395_v49 = vrot.slane %v2768_v31, %v5546_v17 }
 0x2ba   : > { %v3399_v20 = vrot.slane %v2770_v3, %v5546_v17  ;;  %v3824_v4 = vsel %vm1210_vm9, %v1826_v29, %v3391_v55  ;;  %v3387_v10 = vrot.slane %v2771_v28, %v5546_v17  ;;  %v3821_v6 = vsel %vm1210_vm9, %v1833_v15, %v3379_v63 }
 0x2bb   : > { %v3822_v47 = vsel %vm1210_vm9, %v1841_v40, %v3383_v62  ;;  %v3403_v51 = vrot.slane %v2772_v11, %v5546_v17  ;;  %v3825_v33 = vsel %vm1210_vm9, %v1840_v54, %v3395_v49  ;;  %v4284_v2 = vcombine.low %v3820_v24, %v3821_v6 }
 0x2bc   : > { %v3826_v61 = vsel %vm1210_vm9, %v1842_v59, %v3399_v20  ;;  %v3823_v41 = vsel %vm1210_vm9, %v1843_v7, %v3387_v10  ;;  %v4301_v53 = vcombine.low %v3824_v4, %v3825_v33  ;;  %v1595_v29 = vrot.slane %v1567_v36, %v5531_v0 }
 0x2bd   : > { %v1596_v5 = vcombine.high %v6333_v45, %v6333_v45  ;;  %v3827_v15 = vsel %vm1210_vm9, %v1844_v32, %v3403_v51  ;;  %v4285_v40 = vcombine.low %v3822_v47, %v3823_v41  ;;  %v4292_v35 = vrot.slane %v4284_v2, %v7015_v48 }
 0x2be   : > { %v1597_v12 = vcombine.high %v6339_v23, %v6339_v23  ;;  %v4302_v54 = vcombine.low %v3826_v61, %v3827_v15  ;;  %v4309_v59 = vrot.slane %v4301_v53, %v7015_v48  ;;  %v1598_v21 = vcombine.high %v1588_v9, %v1588_v9 }
 0x2bf   : > { %v1599_v27 = vcombine.high %v1595_v29, %v1595_v29  ;;  %v4299_v7 = vrot.slane %v4285_v40, %v7015_v48  ;;  %v2495_v42 = vcombine.high %v6001_v14, %v6001_v14  ;;  %v2502_v1 = vrot.slane %v5985_v37, %v5531_v0 }
 0x2c0   : > { %v2509_v32 = vrot.slane %v6001_v14, %v5531_v0  ;;  %v4316_v25 = vrot.slane %v4302_v54, %v7015_v48  ;;  %v7028_v44 = vcombine.high %v5985_v37, %v5985_v37  ;;  %v7029_v56 = vcombine.high %v5900_v46, %v5900_v46 }
 0x2c1   : > { %v1860_v36 = vcombine.high %v5965_v13, %v5965_v13  ;;  %v4300_v43 = vcombine.low %v4292_v35, %v4299_v7  ;;  %v2523_v18 = vrot.slane %v2495_v42, %v5531_v0  ;;  %v2524_v60 = vcombine.high %v2502_v1, %v2502_v1 }
 0x2c2   : > { %v2516_v16 = vrot.slane %v7028_v44, %v5531_v0  ;;  %v1859_v58 = vrot.slane %v7029_v56, %v5531_v0  ;;  %v2525_v14 = vcombine.high %v2509_v32, %v2509_v32  ;;  %v4317_v50 = vcombine.low %v4309_v59, %v4316_v25 }
 0x2c3   : > { %v3215_v3 = vrot.slane %v2502_v1, %v5546_v17  ;;  %v2527_v55 = vcombine.high %v2523_v18, %v2523_v18  ;;  %v3223_v28 = vrot.slane %v2524_v60, %v5546_v17  ;;  %v3231_v46 = vrot.slane %v2509_v32, %v5546_v17 }
 0x2c4   : > { %v2526_v31 = vcombine.high %v2516_v16, %v2516_v16  ;;  %v3219_v37 = vrot.slane %v2516_v16, %v5546_v17  ;;  %v3235_v63 = vrot.slane %v2523_v18, %v5546_v17  ;;  %v4596_v62 = vpack.c.bf16 %v4317_v50, %v4300_v43  ;;  %v7031_v43 = vld [vmem:[#allocation10_spill] sm:$0xff] }
 0x2c5   : > { %v3239_v11 = vrot.slane %v2525_v14, %v5546_v17  ;;  %v3780_v49 = vsel %vm1210_vm9, %v6333_v45, %v3215_v3  ;;  %v3243_v20 = vrot.slane %v2527_v55, %v5546_v17  ;;  %v3782_v10 = vsel %vm1210_vm9, %v1596_v5, %v3223_v28 }
 0x2c6   : > { %v3227_v24 = vrot.slane %v2526_v31, %v5546_v17  ;;  %v3781_v4 = vsel %vm1210_vm9, %v1588_v9, %v3219_v37  ;;  %v3784_v6 = vsel %vm1210_vm9, %v6339_v23, %v3231_v46  ;;  %5111 = vmatprep.mubr.msk.bf16.mxu1 %vm620_vm0, %v4596_v62  ;;  %v3785_v51 = vsel %vm1210_vm9, %v1595_v29, %v3235_v63 }
 0x2c7   : > { %v3786_v33 = vsel %vm1210_vm9, %v1597_v12, %v3239_v11  ;;  %v4114_v61 = vcombine.low %v3780_v49, %v3781_v4  ;;  %v3787_v45 = vsel %vm1210_vm9, %v1599_v27, %v3243_v20  ;;  %v4131_v41 = vcombine.low %v3784_v6, %v3785_v51 }
 0x2c8   : > { %v3783_v47 = vsel %vm1210_vm9, %v1598_v21, %v3227_v24  ;;  %v1861_v53 = vcombine.high %v1859_v58, %v1859_v58  ;;  %v4132_v5 = vcombine.low %v3786_v33, %v3787_v45  ;;  %v1868_v23 = vrot.slane %v5965_v13, %v5531_v0 }
 0x2c9   : > { %v4115_v2 = vcombine.low %v3782_v10, %v3783_v47  ;;  %v4122_v9 = vrot.slane %v4114_v61, %v7015_v48  ;;  %v1875_v15 = vrot.slane %v1859_v58, %v5531_v0  ;;  %v4139_v29 = vrot.slane %v4131_v41, %v7015_v48 }
 0x2ca   : > { %v1882_v35 = vrot.slane %v1860_v36, %v5531_v0  ;;  %v1889_v12 = vrot.slane %v1861_v53, %v5531_v0  ;;  %v4146_v54 = vrot.slane %v4132_v5, %v7015_v48  ;;  %v1890_v59 = vcombine.high %v1868_v23, %v1868_v23 }
 0x2cb   : > { %v4129_v40 = vrot.slane %v4115_v2, %v7015_v48  ;;  %v1891_v21 = vcombine.high %v1875_v15, %v1875_v15  ;;  %v2789_v27 = vcombine.high %v6039_v52, %v6039_v52  ;;  %v2796_v1 = vrot.slane %v6025_v39, %v5531_v0 }
 0x2cc   : > { %v1892_v42 = vcombine.high %v1882_v35, %v1882_v35  ;;  %v1893_v13 = vcombine.high %v1889_v12, %v1889_v12  ;;  %v4147_v32 = vcombine.low %v4139_v29, %v4146_v54  ;;  %v2803_v25 = vrot.slane %v6039_v52, %v5531_v0 }
 0x2cd   : > { %v4130_v7 = vcombine.low %v4122_v9, %v4129_v40  ;;  %v7030_v44 = vcombine.high %v6025_v39, %v6025_v39  ;;  %v2817_v56 = vrot.slane %v2789_v27, %v5531_v0  ;;  %v2818_v58 = vcombine.high %v2796_v1, %v2796_v1 }
 0x2ce   : > { %v3407_v36 = vrot.slane %v2796_v1, %v5546_v17  ;;  %v1607_v18 = vrot.slane %v7031_v43, %v5531_v0  ;;  %v7032_v60 = vcombine.high %v7031_v43, %v7031_v43  ;;  %v2819_v52 = vcombine.high %v2803_v25, %v2803_v25 }
 0x2cf   : > { %v2810_v16 = vrot.slane %v7030_v44, %v5531_v0  ;;  %v4591_v50 = vpack.c.bf16 %v4147_v32, %v4130_v7  ;;  %v2821_v3 = vcombine.high %v2817_v56, %v2817_v56  ;;  %v3415_v37 = vrot.slane %v2818_v58, %v5546_v17  ;;  %v7033_v32 = vld [vmem:[#allocation12_spill] sm:$0xff] }
 0x2d0   : > { %v1614_v14 = vrot.slane %v7032_v60, %v5531_v0  ;;  %v3423_v55 = vrot.slane %v2803_v25, %v5546_v17  ;;  %v3427_v28 = vrot.slane %v2817_v56, %v5546_v17  ;;  %v3431_v63 = vrot.slane %v2819_v52, %v5546_v17 }
 0x2d1   : > { %v2820_v31 = vcombine.high %v2810_v16, %v2810_v16  ;;  %v3411_v39 = vrot.slane %v2810_v16, %v5546_v17  ;;  %5100 = vmatmul.mubr.msk.bf16.gmra.mrb[8].mxu0 %vm620_vm0, %v4591_v50  ;;  %v3435_v62 = vrot.slane %v2821_v3, %v5546_v17  ;;  %v3828_v24 = vsel %vm1210_vm9, %v1868_v23, %v3407_v36 }
 0x2d2   : > { %v3830_v49 = vsel %vm1210_vm9, %v1890_v59, %v3415_v37  ;;  %v3832_v20 = vsel %vm1210_vm9, %v1875_v15, %v3423_v55  ;;  %v3833_v4 = vsel %vm1210_vm9, %v1889_v12, %v3427_v28  ;;  %v3834_v6 = vsel %vm1210_vm9, %v1891_v21, %v3431_v63 }
 0x2d3   : > { %v3419_v46 = vrot.slane %v2820_v31, %v5546_v17  ;;  %v3829_v11 = vsel %vm1210_vm9, %v1882_v35, %v3411_v39  ;;  %v3835_v47 = vsel %vm1210_vm9, %v1893_v13, %v3435_v62  ;;  %v4335_v61 = vcombine.low %v3832_v20, %v3833_v4 }
 0x2d4   : > { %v4318_v51 = vcombine.low %v3828_v24, %v3829_v11  ;;  %v4336_v45 = vcombine.low %v3834_v6, %v3835_v47  ;;  %v1615_v2 = vcombine.high %v1607_v18, %v1607_v18  ;;  %v1616_v53 = vcombine.high %v1614_v14, %v1614_v14 }
 0x2d5   : > { %v3831_v10 = vsel %vm1210_vm9, %v1892_v42, %v3419_v46  ;;  %v1623_v9 = vrot.slane %v1607_v18, %v5531_v0  ;;  %v1630_v5 = vrot.slane %v1614_v14, %v5531_v0  ;;  %v4343_v15 = vrot.slane %v4335_v61, %v7015_v48 }
 0x2d6   : > { %v4319_v33 = vcombine.low %v3830_v49, %v3831_v10  ;;  %v4326_v41 = vrot.slane %v4318_v51, %v7015_v48  ;;  %v4350_v40 = vrot.slane %v4336_v45, %v7015_v48  ;;  %v1637_v29 = vrot.slane %v1615_v2, %v5531_v0 }
 0x2d7   : > { %v1644_v35 = vrot.slane %v1616_v53, %v5531_v0  ;;  %v1645_v12 = vcombine.high %v1623_v9, %v1623_v9  ;;  %v1646_v54 = vcombine.high %v1630_v5, %v1630_v5  ;;  %v2528_v59 = vcombine.high %v5917_v22, %v5917_v22 }
 0x2d8   : > { %v4333_v23 = vrot.slane %v4319_v33, %v7015_v48  ;;  %v4351_v27 = vcombine.low %v4343_v15, %v4350_v40  ;;  %v1647_v7 = vcombine.high %v1637_v29, %v1637_v29  ;;  %v2535_v42 = vrot.slane %v5917_v22, %v5531_v0 }
 0x2d9   : > { %v1648_v13 = vcombine.high %v1644_v35, %v1644_v35  ;;  %v2542_v1 = vrot.slane %v2528_v59, %v5531_v0  ;;  %v1901_v25 = vrot.slane %v7033_v32, %v5531_v0  ;;  %v7034_v44 = vcombine.high %v7033_v32, %v7033_v32 }
 0x2da   : > { %v4334_v21 = vcombine.low %v4326_v41, %v4333_v23  ;;  %v2543_v58 = vcombine.high %v2535_v42, %v2535_v42  ;;  %v2551_v36 = vrot.slane %v2535_v42, %v5531_v0  ;;  %v2822_v43 = vcombine.high %v5923_v8, %v5923_v8 }
 0x2db   : > { %v1908_v16 = vrot.slane %v7034_v44, %v5531_v0  ;;  %v2544_v18 = vcombine.high %v2542_v1, %v2542_v1  ;;  %v2558_v22 = vrot.slane %v2542_v1, %v5531_v0  ;;  %v1909_v60 = vcombine.high %v1901_v25, %v1901_v25 }
 0x2dc   : > { %v4597_v56 = vpack.c.bf16 %v4351_v27, %v4334_v21  ;;  %v2565_v50 = vrot.slane %v2543_v58, %v5531_v0  ;;  %v2573_v52 = vcombine.high %v2551_v36, %v2551_v36  ;;  %v3247_v31 = vrot.slane %v2551_v36, %v5546_v17 }
 0x2dd   : > { %v1910_v14 = vcombine.high %v1908_v16, %v1908_v16  ;;  %v6474_v3 = vrot.slane %v1901_v25, %v5531_v0  ;;  %v2572_v39 = vrot.slane %v2544_v18, %v5531_v0  ;;  %v2574_v37 = vcombine.high %v2558_v22, %v2558_v22 }
 0x2de   : > { %5112 = vmatmul.mubr.msk.bf16.gmra.mrb[4].mxu1 %vm620_vm0, %v4597_v56  ;;  %v3263_v55 = vrot.slane %v2558_v22, %v5546_v17  ;;  %v6479_v28 = vrot.slane %v1908_v16, %v5531_v0  ;;  %v2575_v46 = vcombine.high %v2565_v50, %v2565_v50  ;;  %v3251_v63 = vrot.slane %v2565_v50, %v5546_v17 }
 0x2df   : > { %v3255_v62 = vrot.slane %v2573_v52, %v5546_v17  ;;  %v3788_v24 = vsel %vm1210_vm9, %v1623_v9, %v3247_v31  ;;  %v2576_v11 = vcombine.high %v2572_v39, %v2572_v39  ;;  %v3267_v49 = vrot.slane %v2572_v39, %v5546_v17 }
 0x2e0   : > { %v3271_v20 = vrot.slane %v2574_v37, %v5546_v17  ;;  %v3792_v4 = vsel %vm1210_vm9, %v1630_v5, %v3263_v55  ;;  %v3259_v10 = vrot.slane %v2575_v46, %v5546_v17  ;;  %v3789_v6 = vsel %vm1210_vm9, %v1637_v29, %v3251_v63 }
 0x2e1   : > { %v3790_v47 = vsel %vm1210_vm9, %v1645_v12, %v3255_v62  ;;  %v1931_v51 = vrot.slane %v1909_v60, %v5531_v0  ;;  %v3275_v33 = vrot.slane %v2576_v11, %v5546_v17  ;;  %v3793_v61 = vsel %vm1210_vm9, %v1644_v35, %v3267_v49 }
 0x2e2   : > { %v3794_v45 = vsel %vm1210_vm9, %v1646_v54, %v3271_v20  ;;  %v4148_v2 = vcombine.low %v3788_v24, %v3789_v6  ;;  %v3791_v41 = vsel %vm1210_vm9, %v1647_v7, %v3259_v10  ;;  %v4165_v53 = vcombine.low %v3792_v4, %v3793_v61 }
 0x2e3   : > { %v1938_v9 = vrot.slane %v1910_v14, %v5531_v0  ;;  %v1939_v5 = vcombine.high %v6474_v3, %v6474_v3  ;;  %v3795_v23 = vsel %vm1210_vm9, %v1648_v13, %v3275_v33  ;;  %v4149_v15 = vcombine.low %v3790_v47, %v3791_v41 }
 0x2e4   : > { %v4156_v40 = vrot.slane %v4148_v2, %v7015_v48  ;;  %v1940_v29 = vcombine.high %v6479_v28, %v6479_v28  ;;  %v4166_v35 = vcombine.low %v3794_v45, %v3795_v23  ;;  %v4173_v12 = vrot.slane %v4165_v53, %v7015_v48 }
 0x2e5   : > { %v1941_v54 = vcombine.high %v1931_v51, %v1931_v51  ;;  %v1942_v59 = vcombine.high %v1938_v9, %v1938_v9  ;;  %v4163_v21 = vrot.slane %v4149_v15, %v7015_v48  ;;  %v2829_v27 = vrot.slane %v5923_v8, %v5531_v0 }
 0x2e6   : > { %v2836_v7 = vrot.slane %v2822_v43, %v5531_v0  ;;  %v7035_v42 = vcombine.high %v5898_v34, %v5898_v34  ;;  %v4180_v1 = vrot.slane %v4166_v35, %v7015_v48  ;;  %v1664_v32 = vcombine.high %v5953_v30, %v5953_v30 }
 0x2e7   : > { %v6516_v25 = vrot.slane %v5953_v30, %v5531_v0  ;;  %v2593_v44 = vcombine.high %v6006_v19, %v6006_v19  ;;  %v4164_v8 = vcombine.low %v4156_v40, %v4163_v21  ;;  %v2837_v16 = vcombine.high %v2829_v27, %v2829_v27 }
 0x2e8   : > { %v1663_v13 = vrot.slane %v7035_v42, %v5531_v0  ;;  %v2838_v56 = vcombine.high %v2836_v7, %v2836_v7  ;;  %v2845_v58 = vrot.slane %v2829_v27, %v5531_v0  ;;  %v4181_v36 = vcombine.low %v4173_v12, %v4180_v1 }
 0x2e9   : > { %v2852_v34 = vrot.slane %v2836_v7, %v5531_v0  ;;  %v2859_v22 = vrot.slane %v2837_v16, %v5531_v0  ;;  %v1686_v39 = vrot.slane %v1664_v32, %v5531_v0  ;;  %v1694_v41 = vcombine.high %v6516_v25, %v6516_v25 }
 0x2ea   : > { %v1665_v43 = vcombine.high %v1663_v13, %v1663_v13  ;;  %v6523_v18 = vrot.slane %v1663_v13, %v5531_v0  ;;  %v2866_v30 = vrot.slane %v2838_v56, %v5531_v0  ;;  %v2867_v60 = vcombine.high %v2845_v58, %v2845_v58 }
 0x2eb   : > { %v3439_v14 = vrot.slane %v2845_v58, %v5546_v17  ;;  %v4592_v50 = vpack.c.bf16 %v4181_v36, %v4164_v8  ;;  %v2868_v52 = vcombine.high %v2852_v34, %v2852_v34  ;;  %v3455_v31 = vrot.slane %v2852_v34, %v5546_v17 }
 0x2ec   : > { %v2869_v37 = vcombine.high %v2859_v22, %v2859_v22  ;;  %v2870_v55 = vcombine.high %v2866_v30, %v2866_v30  ;;  %v3443_v46 = vrot.slane %v2859_v22, %v5546_v17  ;;  %v3447_v63 = vrot.slane %v2867_v60, %v5546_v17 }
 0x2ed   : > { %5103 = vmatprep.mubr.msk.bf16.mxu0 %vm620_vm0, %v4592_v50  ;;  %v3459_v62 = vrot.slane %v2866_v30, %v5546_v17  ;;  %v3463_v24 = vrot.slane %v2868_v52, %v5546_v17  ;;  %v3836_v11 = vsel %vm1210_vm9, %v6474_v3, %v3439_v14  ;;  %v3840_v49 = vsel %vm1210_vm9, %v6479_v28, %v3455_v31 }
 0x2ee   : > { %v3451_v20 = vrot.slane %v2869_v37, %v5546_v17  ;;  %v3467_v4 = vrot.slane %v2870_v55, %v5546_v17  ;;  %v3837_v10 = vsel %vm1210_vm9, %v1931_v51, %v3443_v46  ;;  %v3838_v6 = vsel %vm1210_vm9, %v1939_v5, %v3447_v63 }
 0x2ef   : > { %v3841_v47 = vsel %vm1210_vm9, %v1938_v9, %v3459_v62  ;;  %v3842_v33 = vsel %vm1210_vm9, %v1940_v29, %v3463_v24  ;;  %v4352_v61 = vcombine.low %v3836_v11, %v3837_v10  ;;  %v1693_v45 = vrot.slane %v1665_v43, %v5531_v0 }
 0x2f0   : > { %v3839_v3 = vsel %vm1210_vm9, %v1941_v54, %v3451_v20  ;;  %v3843_v2 = vsel %vm1210_vm9, %v1942_v59, %v3467_v4  ;;  %v4369_v28 = vcombine.low %v3840_v49, %v3841_v47  ;;  %v1695_v9 = vcombine.high %v6523_v18, %v6523_v18 }
 0x2f1   : > { %v4353_v53 = vcombine.low %v3838_v6, %v3839_v3  ;;  %v4360_v51 = vrot.slane %v4352_v61, %v7015_v48  ;;  %v4370_v23 = vcombine.low %v3842_v33, %v3843_v2  ;;  %v1696_v15 = vcombine.high %v1686_v39, %v1686_v39  ;;  %v7038_v3 = vld [vmem:[#allocation26_spill] sm:$0xff]  ;;  %v7039_v2 = vld [vmem:[#allocation24_spill] sm:$0xff] }
 0x2f2   : > { %v4377_v5 = vrot.slane %v4369_v28, %v7015_v48  ;;  %v1697_v40 = vcombine.high %v1693_v45, %v1693_v45  ;;  %v2600_v29 = vrot.slane %v5988_v57, %v5531_v0  ;;  %v2607_v54 = vrot.slane %v6006_v19, %v5531_v0 }
 0x2f3   : > { %v4367_v35 = vrot.slane %v4353_v53, %v7015_v48  ;;  %v4384_v12 = vrot.slane %v4370_v23, %v7015_v48  ;;  %v7036_v59 = vcombine.high %v5988_v57, %v5988_v57  ;;  %v2621_v27 = vrot.slane %v2593_v44, %v5531_v0 }
 0x2f4   : > { %v2622_v7 = vcombine.high %v2600_v29, %v2600_v29  ;;  %v3279_v42 = vrot.slane %v2600_v29, %v5546_v17  ;;  %v7037_v13 = vcombine.high %v5902_v26, %v5902_v26  ;;  %v2623_v16 = vcombine.high %v2607_v54, %v2607_v54 }
 0x2f5   : > { %v2614_v21 = vrot.slane %v7036_v59, %v5531_v0  ;;  %v4368_v32 = vcombine.low %v4360_v51, %v4367_v35  ;;  %v4385_v8 = vcombine.low %v4377_v5, %v4384_v12  ;;  %v2625_v19 = vcombine.high %v2621_v27, %v2621_v27  ;;  %v7041_v59 = vld [vmem:[#allocation13_spill] sm:$0xff] }
 0x2f6   : > { %v1957_v1 = vrot.slane %v7037_v13, %v5531_v0  ;;  %v3287_v57 = vrot.slane %v2622_v7, %v5546_v17  ;;  %v3295_v36 = vrot.slane %v2607_v54, %v5546_v17  ;;  %v3299_v43 = vrot.slane %v2621_v27, %v5546_v17 }
 0x2f7   : > { %v2624_v56 = vcombine.high %v2614_v21, %v2614_v21  ;;  %v3283_v58 = vrot.slane %v2614_v21, %v5546_v17  ;;  %v4598_v44 = vpack.c.bf16 %v4385_v8, %v4368_v32  ;;  %v3303_v22 = vrot.slane %v2623_v16, %v5546_v17 }
 0x2f8   : > { %v3307_v26 = vrot.slane %v2625_v19, %v5546_v17  ;;  %v3796_v30 = vsel %vm1210_vm9, %v6516_v25, %v3279_v42  ;;  %v3798_v14 = vsel %vm1210_vm9, %v1694_v41, %v3287_v57  ;;  %v3800_v52 = vsel %vm1210_vm9, %v6523_v18, %v3295_v36 }
 0x2f9   : > { %v3291_v34 = vrot.slane %v2624_v56, %v5546_v17  ;;  %v3797_v60 = vsel %vm1210_vm9, %v1686_v39, %v3283_v58  ;;  %5115 = vmatprep.mubr.msk.bf16.mxu1 %vm620_vm0, %v4598_v44  ;;  %v3801_v31 = vsel %vm1210_vm9, %v1693_v45, %v3299_v43  ;;  %v3802_v37 = vsel %vm1210_vm9, %v1695_v9, %v3303_v22 }
 0x2fa   : > { %v3803_v55 = vsel %vm1210_vm9, %v1697_v40, %v3307_v26  ;;  %v4182_v46 = vcombine.low %v3796_v30, %v3797_v60  ;;  %v4199_v25 = vcombine.low %v3800_v52, %v3801_v31  ;;  %v1958_v39 = vcombine.high %v5973_v38, %v5973_v38 }
 0x2fb   : > { %v3799_v50 = vsel %vm1210_vm9, %v1696_v15, %v3291_v34  ;;  %v4200_v62 = vcombine.low %v3802_v37, %v3803_v55  ;;  %v1959_v24 = vcombine.high %v1957_v1, %v1957_v1  ;;  %v1966_v11 = vrot.slane %v5973_v38, %v5531_v0 }
 0x2fc   : > { %v4183_v63 = vcombine.low %v3798_v14, %v3799_v50  ;;  %v4190_v49 = vrot.slane %v4182_v46, %v7015_v48  ;;  %v4207_v20 = vrot.slane %v4199_v25, %v7015_v48  ;;  %v1973_v4 = vrot.slane %v1957_v1, %v5531_v0 }
 0x2fd   : > { %v4214_v10 = vrot.slane %v4200_v62, %v7015_v48  ;;  %v1980_v6 = vrot.slane %v1958_v39, %v5531_v0  ;;  %v1987_v47 = vrot.slane %v1959_v24, %v5531_v0  ;;  %v1988_v33 = vcombine.high %v1966_v11, %v1966_v11 }
 0x2fe   : > { %v4197_v18 = vrot.slane %v4183_v63, %v7015_v48  ;;  %v1989_v45 = vcombine.high %v1973_v4, %v1973_v4  ;;  %v2887_v38 = vcombine.high %v7038_v3, %v7038_v3  ;;  %v2894_v28 = vrot.slane %v7039_v2, %v5531_v0 }
 0x2ff   : > { %v4215_v41 = vcombine.low %v4207_v20, %v4214_v10  ;;  %v1990_v53 = vcombine.high %v1980_v6, %v1980_v6  ;;  %v1991_v51 = vcombine.high %v1987_v47, %v1987_v47  ;;  %v2901_v23 = vrot.slane %v7038_v3, %v5531_v0 }
 0x300   : > { %v4198_v61 = vcombine.low %v4190_v49, %v4197_v18  ;;  %v7040_v9 = vcombine.high %v7039_v2, %v7039_v2  ;;  %v2915_v15 = vrot.slane %v2887_v38, %v5531_v0  ;;  %v2916_v40 = vcombine.high %v2894_v28, %v2894_v28  ;;  %v7044_v38 = vld [vmem:[#allocation18_spill] sm:$0xff] }
 0x301   : > { %v3471_v29 = vrot.slane %v2894_v28, %v5546_v17  ;;  %v2917_v12 = vcombine.high %v2901_v23, %v2901_v23  ;;  %v3487_v54 = vrot.slane %v2901_v23, %v5546_v17  ;;  %v1999_v21 = vrot.slane %v7041_v59, %v5531_v0 }
 0x302   : > { %v2908_v5 = vrot.slane %v7040_v9, %v5531_v0  ;;  %v4593_v35 = vpack.c.bf16 %v4215_v41, %v4198_v61  ;;  %v2919_v7 = vcombine.high %v2915_v15, %v2915_v15  ;;  %v3479_v13 = vrot.slane %v2916_v40, %v5546_v17  ;;  %v7046_v41 = vld [vmem:[#allocation22_spill] sm:$0xff] }
 0x303   : > { %v3491_v1 = vrot.slane %v2915_v15, %v5546_v17  ;;  %v3495_v32 = vrot.slane %v2917_v12, %v5546_v17  ;;  %v3844_v8 = vsel %vm1210_vm9, %v1966_v11, %v3471_v29  ;;  %v3848_v16 = vsel %vm1210_vm9, %v1973_v4, %v3487_v54  ;;  %v7043_v11 = vld [vmem:[#allocation20_spill] sm:$0xff] }
 0x304   : > { %v2918_v27 = vcombine.high %v2908_v5, %v2908_v5  ;;  %v3475_v42 = vrot.slane %v2908_v5, %v5546_v17  ;;  %5104 = vmatmul.mubr.msk.bf16.gmra.mrb[12].mxu0 %vm620_vm0, %v4593_v35  ;;  %v3499_v19 = vrot.slane %v2919_v7, %v5546_v17  ;;  %v3846_v57 = vsel %vm1210_vm9, %v1988_v33, %v3479_v13 }
 0x305   : > { %v3849_v36 = vsel %vm1210_vm9, %v1987_v47, %v3491_v1  ;;  %v3850_v44 = vsel %vm1210_vm9, %v1989_v45, %v3495_v32  ;;  %v7042_v43 = vcombine.high %v7041_v59, %v7041_v59  ;;  %v2007_v14 = vcombine.high %v1999_v21, %v1999_v21 }
 0x306   : > { %v3483_v56 = vrot.slane %v2918_v27, %v5546_v17  ;;  %v3845_v58 = vsel %vm1210_vm9, %v1980_v6, %v3475_v42  ;;  %v3851_v30 = vsel %vm1210_vm9, %v1991_v51, %v3499_v19  ;;  %v4403_v60 = vcombine.low %v3848_v16, %v3849_v36 }
 0x307   : > { %v4386_v34 = vcombine.low %v3844_v8, %v3845_v58  ;;  %v2006_v22 = vrot.slane %v7042_v43, %v5531_v0  ;;  %v4404_v31 = vcombine.low %v3850_v44, %v3851_v30  ;;  %v2015_v46 = vrot.slane %v1999_v21, %v5531_v0 }
 0x308   : > { %v3847_v26 = vsel %vm1210_vm9, %v1990_v53, %v3483_v56  ;;  %v4411_v55 = vrot.slane %v4403_v60, %v7015_v48  ;;  %v2029_v25 = vrot.slane %v2007_v14, %v5531_v0  ;;  %v2920_v49 = vcombine.high %v7043_v11, %v7043_v11 }
 0x309   : > { %v4387_v50 = vcombine.low %v3846_v57, %v3847_v26  ;;  %v4394_v52 = vrot.slane %v4386_v34, %v7015_v48  ;;  %v2008_v37 = vcombine.high %v2006_v22, %v2006_v22  ;;  %v2022_v63 = vrot.slane %v2006_v22, %v5531_v0 }
 0x30a   : > { %v4418_v39 = vrot.slane %v4404_v31, %v7015_v48  ;;  %v2037_v18 = vcombine.high %v2015_v46, %v2015_v46  ;;  %v2039_v4 = vcombine.high %v2029_v25, %v2029_v25  ;;  %v2927_v10 = vrot.slane %v7043_v11, %v5531_v0 }
 0x30b   : > { %v4401_v62 = vrot.slane %v4387_v50, %v7015_v48  ;;  %v2036_v24 = vrot.slane %v2008_v37, %v5531_v0  ;;  %v2038_v20 = vcombine.high %v2022_v63, %v2022_v63  ;;  %v2934_v61 = vrot.slane %v2920_v49, %v5531_v0 }
 0x30c   : > { %v4419_v47 = vcombine.low %v4411_v55, %v4418_v39  ;;  %v2935_v45 = vcombine.high %v2927_v10, %v2927_v10  ;;  %v2943_v3 = vrot.slane %v2927_v10, %v5531_v0  ;;  %v7045_v2 = vcombine.high %v7044_v38, %v7044_v38  ;;  %v7050_v10 = vld [vmem:[#allocation14_spill] sm:$0xff] }
 0x30d   : > { %v4402_v6 = vcombine.low %v4394_v52, %v4401_v62  ;;  %v2040_v33 = vcombine.high %v2036_v24, %v2036_v24  ;;  %v2056_v53 = vcombine.high %v7046_v41, %v7046_v41  ;;  %v2936_v23 = vcombine.high %v2934_v61, %v2934_v61  ;;  %v7047_v62 = vld [vmem:[#allocation27_spill] sm:$0xff] }
 0x30e   : > { %v2055_v28 = vrot.slane %v7045_v2, %v5531_v0  ;;  %v2950_v9 = vrot.slane %v2934_v61, %v5531_v0  ;;  %v6656_v5 = vrot.slane %v7046_v41, %v5531_v0  ;;  %v2957_v15 = vrot.slane %v2935_v45, %v5531_v0 }
 0x30f   : > { %v4599_v51 = vpack.c.bf16 %v4419_v47, %v4402_v6  ;;  %v2965_v40 = vcombine.high %v2943_v3, %v2943_v3  ;;  %v3503_v29 = vrot.slane %v2943_v3, %v5546_v17  ;;  %v2964_v12 = vrot.slane %v2936_v23, %v5531_v0 }
 0x310   : > { %v2057_v35 = vcombine.high %v2055_v28, %v2055_v28  ;;  %v2966_v54 = vcombine.high %v2950_v9, %v2950_v9  ;;  %v3519_v59 = vrot.slane %v2950_v9, %v5546_v17  ;;  %v2071_v21 = vrot.slane %v2055_v28, %v5531_v0 }
 0x311   : > { %5116 = vmatmul.mubr.msk.bf16.gmra.mrb[8].mxu1 %vm620_vm0, %v4599_v51  ;;  %v2967_v27 = vcombine.high %v2957_v15, %v2957_v15  ;;  %v3507_v7 = vrot.slane %v2957_v15, %v5546_v17  ;;  %v3511_v42 = vrot.slane %v2965_v40, %v5546_v17  ;;  %v3852_v13 = vsel %vm1210_vm9, %v2015_v46, %v3503_v29 }
 0x312   : > { %v2968_v1 = vcombine.high %v2964_v12, %v2964_v12  ;;  %v3523_v32 = vrot.slane %v2964_v12, %v5546_v17  ;;  %v3527_v8 = vrot.slane %v2966_v54, %v5546_v17  ;;  %v3856_v16 = vsel %vm1210_vm9, %v2022_v63, %v3519_v59 }
 0x313   : > { %v3515_v56 = vrot.slane %v2967_v27, %v5546_v17  ;;  %v3853_v19 = vsel %vm1210_vm9, %v2029_v25, %v3507_v7  ;;  %v3854_v58 = vsel %vm1210_vm9, %v2037_v18, %v3511_v42  ;;  %v2078_v57 = vrot.slane %v2056_v53, %v5531_v0 }
 0x314   : > { %v3531_v36 = vrot.slane %v2968_v1, %v5546_v17  ;;  %v3857_v44 = vsel %vm1210_vm9, %v2036_v24, %v3523_v32  ;;  %v3858_v34 = vsel %vm1210_vm9, %v2038_v20, %v3527_v8  ;;  %v4420_v43 = vcombine.low %v3852_v13, %v3853_v19  ;;  %v7048_v24 = vld [vmem:[#allocation25_spill] sm:$0xff]  ;;  %v7052_v19 = vld [vmem:[#allocation28_spill] sm:$0xff] }
 0x315   : > { %v3855_v22 = vsel %vm1210_vm9, %v2039_v4, %v3515_v56  ;;  %v4437_v26 = vcombine.low %v3856_v16, %v3857_v44  ;;  %v2085_v30 = vrot.slane %v2057_v35, %v5531_v0  ;;  %v2086_v60 = vcombine.high %v6656_v5, %v6656_v5 }
 0x316   : > { %v3859_v14 = vsel %vm1210_vm9, %v2040_v33, %v3531_v36  ;;  %v4421_v50 = vcombine.low %v3854_v58, %v3855_v22  ;;  %v4428_v52 = vrot.slane %v4420_v43, %v7015_v48  ;;  %v2087_v31 = vcombine.high %v2071_v21, %v2071_v21 }
 0x317   : > { %v4438_v37 = vcombine.low %v3858_v34, %v3859_v14  ;;  %v4445_v55 = vrot.slane %v4437_v26, %v7015_v48  ;;  %v2088_v46 = vcombine.high %v2078_v57, %v2078_v57  ;;  %v2089_v63 = vcombine.high %v2085_v30, %v2085_v30  ;;  %v7053_v14 = vld [vmem:[#allocation21_spill] sm:$0xff] }
 0x318   : > { %v4435_v25 = vrot.slane %v4421_v50, %v7015_v48  ;;  %v2985_v39 = vcombine.high %v7047_v62, %v7047_v62  ;;  %v2992_v11 = vrot.slane %v7048_v24, %v5531_v0  ;;  %v2999_v49 = vrot.slane %v7047_v62, %v5531_v0  ;;  %v7054_v62 = vld [vmem:[#allocation19_spill] sm:$0xff] }
 0x319   : > { %v4452_v18 = vrot.slane %v4438_v37, %v7015_v48  ;;  %v7049_v20 = vcombine.high %v7048_v24, %v7048_v24  ;;  %v2097_v6 = vrot.slane %v7050_v10, %v5531_v0  ;;  %v7051_v47 = vcombine.high %v7050_v10, %v7050_v10 }
 0x31a   : > { %v4436_v61 = vcombine.low %v4428_v52, %v4435_v25  ;;  %v3013_v45 = vrot.slane %v2985_v39, %v5531_v0  ;;  %v3014_v3 = vcombine.high %v2992_v11, %v2992_v11  ;;  %v3015_v38 = vcombine.high %v2999_v49, %v2999_v49 }
 0x31b   : > { %v3006_v4 = vrot.slane %v7049_v20, %v5531_v0  ;;  %v2104_v33 = vrot.slane %v7051_v47, %v5531_v0  ;;  %v4453_v2 = vcombine.low %v4445_v55, %v4452_v18  ;;  %v3535_v41 = vrot.slane %v2992_v11, %v5546_v17  ;;  %v7056_v20 = vld [vmem:[#allocation23_spill] sm:$0xff] }
 0x31c   : > { %v3017_v51 = vcombine.high %v3013_v45, %v3013_v45  ;;  %v3543_v23 = vrot.slane %v3014_v3, %v5546_v17  ;;  %v3551_v9 = vrot.slane %v2999_v49, %v5546_v17  ;;  %v3555_v15 = vrot.slane %v3013_v45, %v5546_v17 }
 0x31d   : > { %v3016_v28 = vcombine.high %v3006_v4, %v3006_v4  ;;  %v3539_v53 = vrot.slane %v3006_v4, %v5546_v17  ;;  %v4600_v40 = vpack.c.bf16 %v4453_v2, %v4436_v61  ;;  %v3559_v35 = vrot.slane %v3015_v38, %v5546_v17 }
 0x31e   : > { %v3860_v12 = vsel %vm1210_vm9, %v6656_v5, %v3535_v41  ;;  %v3563_v54 = vrot.slane %v3017_v51, %v5546_v17  ;;  %v3862_v27 = vsel %vm1210_vm9, %v2086_v60, %v3543_v23  ;;  %v3864_v7 = vsel %vm1210_vm9, %v2071_v21, %v3551_v9 }
 0x31f   : > { %v3547_v29 = vrot.slane %v3016_v28, %v5546_v17  ;;  %v3861_v59 = vsel %vm1210_vm9, %v2078_v57, %v3539_v53  ;;  %5119 = vmatprep.mubr.msk.bf16.mxu1 %vm620_vm0, %v4600_v40  ;;  %v3865_v13 = vsel %vm1210_vm9, %v2085_v30, %v3555_v15  ;;  %v3866_v1 = vsel %vm1210_vm9, %v2087_v31, %v3559_v35 }
 0x320   : > { %v4454_v32 = vcombine.low %v3860_v12, %v3861_v59  ;;  %v3867_v8 = vsel %vm1210_vm9, %v2089_v63, %v3563_v54  ;;  %v4471_v16 = vcombine.low %v3864_v7, %v3865_v13  ;;  %v2105_v56 = vcombine.high %v2097_v6, %v2097_v6 }
 0x321   : > { %v3863_v42 = vsel %vm1210_vm9, %v2088_v46, %v3547_v29  ;;  %v3082_v58 = vcombine.high %v7052_v19, %v7052_v19  ;;  %v4472_v57 = vcombine.low %v3866_v1, %v3867_v8  ;;  %v2106_v36 = vcombine.high %v2104_v33, %v2104_v33 }
 0x322   : > { %v4455_v5 = vcombine.low %v3862_v27, %v3863_v42  ;;  %v2113_v21 = vrot.slane %v2097_v6, %v5531_v0  ;;  %v4462_v44 = vrot.slane %v4454_v32, %v7015_v48  ;;  %v2120_v43 = vrot.slane %v2104_v33, %v5531_v0 }
 0x323   : > { %v2127_v22 = vrot.slane %v2105_v56, %v5531_v0  ;;  %v4479_v26 = vrot.slane %v4471_v16, %v7015_v48  ;;  %v4486_v30 = vrot.slane %v4472_v57, %v7015_v48  ;;  %v2134_v60 = vrot.slane %v2106_v36, %v5531_v0 }
 0x324   : > { %v4469_v34 = vrot.slane %v4455_v5, %v7015_v48  ;;  %v3018_v50 = vcombine.high %v7053_v14, %v7053_v14  ;;  %v2135_v31 = vcombine.high %v2113_v21, %v2113_v21  ;;  %v2136_v37 = vcombine.high %v2120_v43, %v2120_v43 }
 0x325   : > { %v3025_v55 = vrot.slane %v7053_v14, %v5531_v0  ;;  %v4487_v46 = vcombine.low %v4479_v26, %v4486_v30  ;;  %v2137_v63 = vcombine.high %v2127_v22, %v2127_v22  ;;  %v7055_v39 = vcombine.high %v7054_v62, %v7054_v62 }
 0x326   : > { %v4470_v52 = vcombine.low %v4462_v44, %v4469_v34  ;;  %v3032_v25 = vrot.slane %v3018_v50, %v5531_v0  ;;  %v2138_v11 = vcombine.high %v2134_v60, %v2134_v60  ;;  %v2154_v4 = vcombine.high %v7056_v20, %v7056_v20 }
 0x327   : > { %v2153_v24 = vrot.slane %v7055_v39, %v5531_v0  ;;  %v3033_v49 = vcombine.high %v3025_v55, %v3025_v55  ;;  %v3041_v18 = vrot.slane %v3025_v55, %v5531_v0  ;;  %v6746_v33 = vrot.slane %v7056_v20, %v5531_v0 }
 0x328   : > { %v4601_v10 = vpack.c.bf16 %v4487_v46, %v4470_v52  ;;  %v3034_v6 = vcombine.high %v3032_v25, %v3032_v25  ;;  %v3048_v47 = vrot.slane %v3032_v25, %v5531_v0  ;;  %v2176_v7 = vrot.slane %v2154_v4, %v5531_v0 }
 0x329   : > { %v3055_v61 = vrot.slane %v3033_v49, %v5531_v0  ;;  %v3063_v45 = vcombine.high %v3041_v18, %v3041_v18  ;;  %v3567_v3 = vrot.slane %v3041_v18, %v5546_v17  ;;  %v2155_v38 = vcombine.high %v2153_v24, %v2153_v24 }
 0x32a   : > { %5120 = vmatmul.mubr.msk.bf16.gmra.mrb[12].mxu1 %vm620_vm0, %v4601_v10  ;;  %v3062_v2 = vrot.slane %v3034_v6, %v5531_v0  ;;  %v3064_v28 = vcombine.high %v3048_v47, %v3048_v47  ;;  %v3583_v41 = vrot.slane %v3048_v47, %v5546_v17  ;;  %v2169_v53 = vrot.slane %v2153_v24, %v5531_v0 }
 0x32b   : > { %v3065_v51 = vcombine.high %v3055_v61, %v3055_v61  ;;  %v3571_v23 = vrot.slane %v3055_v61, %v5546_v17  ;;  %v3575_v9 = vrot.slane %v3063_v45, %v5546_v17  ;;  %v3868_v15 = vsel %vm1210_vm9, %v2113_v21, %v3567_v3 }
 0x32c   : > { %v3066_v40 = vcombine.high %v3062_v2, %v3062_v2  ;;  %v3587_v29 = vrot.slane %v3062_v2, %v5546_v17  ;;  %v3591_v35 = vrot.slane %v3064_v28, %v5546_v17  ;;  %v3872_v12 = vsel %vm1210_vm9, %v2120_v43, %v3583_v41 }
 0x32d   : > { %v3579_v54 = vrot.slane %v3065_v51, %v5546_v17  ;;  %v3869_v59 = vsel %vm1210_vm9, %v2127_v22, %v3571_v23  ;;  %v3870_v27 = vsel %vm1210_vm9, %v2135_v31, %v3575_v9  ;;  %v2183_v16 = vrot.slane %v2155_v38, %v5531_v0  ;;  %v7057_v22 = vld [vmem:[#allocation29_spill] sm:$0xff] }
 0x32e   : > { %v3595_v42 = vrot.slane %v3066_v40, %v5546_v17  ;;  %v3873_v13 = vsel %vm1210_vm9, %v2134_v60, %v3587_v29  ;;  %v3874_v1 = vsel %vm1210_vm9, %v2136_v37, %v3591_v35  ;;  %v4488_v32 = vcombine.low %v3868_v15, %v3869_v59 }
 0x32f   : > { %v3871_v8 = vsel %vm1210_vm9, %v2137_v63, %v3579_v54  ;;  %v4505_v5 = vcombine.low %v3872_v12, %v3873_v13  ;;  %v2184_v36 = vcombine.high %v6746_v33, %v6746_v33  ;;  %v2185_v21 = vcombine.high %v2169_v53, %v2169_v53 }
 0x330   : > { %v3875_v56 = vsel %vm1210_vm9, %v2138_v11, %v3595_v42  ;;  %v4489_v57 = vcombine.low %v3870_v27, %v3871_v8  ;;  %v4496_v44 = vrot.slane %v4488_v32, %v7015_v48  ;;  %v2186_v43 = vcombine.high %v2176_v7, %v2176_v7 }
 0x331   : > { %v4506_v34 = vcombine.low %v3874_v1, %v3875_v56  ;;  %v3083_v26 = vcombine.high %v7057_v22, %v7057_v22  ;;  %v3090_v60 = vrot.slane %v7052_v19, %v5531_v0  ;;  %v3097_v14 = vrot.slane %v7057_v22, %v5531_v0 }
 0x332   : > { %v4503_v30 = vrot.slane %v4489_v57, %v7015_v48  ;;  %v3104_v50 = vrot.slane %v3082_v58, %v5531_v0  ;;  %v4513_v52 = vrot.slane %v4505_v5, %v7015_v48  ;;  %v2187_v37 = vcombine.high %v2183_v16, %v2183_v16 }
 0x333   : > { %v4520_v31 = vrot.slane %v4506_v34, %v7015_v48  ;;  %v3111_v55 = vrot.slane %v3083_v26, %v5531_v0  ;;  %v3112_v63 = vcombine.high %v3090_v60, %v3090_v60  ;;  %v3113_v25 = vcombine.high %v3097_v14, %v3097_v14 }
 0x334   : > { %v4504_v46 = vcombine.low %v4496_v44, %v4503_v30  ;;  %v3114_v62 = vcombine.high %v3104_v50, %v3104_v50  ;;  %v3599_v11 = vrot.slane %v3090_v60, %v5546_v17  ;;  %v3603_v49 = vrot.slane %v3104_v50, %v5546_v17 }
 0x335   : > { %v4521_v39 = vcombine.low %v4513_v52, %v4520_v31  ;;  %v3115_v24 = vcombine.high %v3111_v55, %v3111_v55  ;;  %v3607_v19 = vrot.slane %v3112_v63, %v5546_v17  ;;  %v3615_v18 = vrot.slane %v3097_v14, %v5546_v17 }
 0x336   : > { %v3611_v58 = vrot.slane %v3114_v62, %v5546_v17  ;;  %v3619_v20 = vrot.slane %v3111_v55, %v5546_v17  ;;  %v3623_v0 = vrot.slane %v3113_v25, %v5546_v17  ;;  %v3876_v6 = vsel %vm1210_vm9, %v6746_v33, %v3599_v11 }
 0x337   : > { %v4602_v4 = vpack.c.bf16 %v4521_v39, %v4504_v46  ;;  %v3627_v10 = vrot.slane %v3115_v24, %v5546_v17  ;;  %v3877_v47 = vsel %vm1210_vm9, %v2176_v7, %v3603_v49  ;;  %v3878_v61 = vsel %vm1210_vm9, %v2184_v36, %v3607_v19 }
 0x338   : > { %v3879_v45 = vsel %vm1210_vm9, %v2186_v43, %v3611_v58  ;;  %v3880_v3 = vsel %vm1210_vm9, %v2169_v53, %v3615_v18  ;;  %v3881_v38 = vsel %vm1210_vm9, %v2183_v16, %v3619_v20  ;;  %v3882_v2 = vsel %vm1210_vm9, %v2185_v21, %v3623_v0 }
 0x339   : > { %5123 = vmatprep.mubr.msk.bf16.mxu1 %vm620_vm0, %v4602_v4  ;;  %v3883_v17 = vsel %vm1210_vm9, %v2187_v37, %v3627_v10  ;;  %v4522_v28 = vcombine.low %v3876_v6, %v3877_v47  ;;  %v4523_v41 = vcombine.low %v3878_v61, %v3879_v45  ;;  %v4539_v33 = vcombine.low %v3880_v3, %v3881_v38 }
 0x33a   : > { %v4540_v51 = vcombine.low %v3882_v2, %v3883_v17 }
 0x33b   : > { %v4530_v23 = vrot.slane %v4522_v28, %v7015_v48  ;;  %v4537_v9 = vrot.slane %v4523_v41, %v7015_v48  ;;  %v4547_v15 = vrot.slane %v4539_v33, %v7015_v48 }
 0x33c   : > { %v4554_v53 = vrot.slane %v4540_v51, %v7015_v48 }
 0x33d   : > { %v4538_v40 = vcombine.low %v4530_v23, %v4537_v9 }
 0x33e   : > { %v4555_v29 = vcombine.low %v4547_v15, %v4554_v53 }
 0x340   : > { %v4603_v35 = vpack.c.bf16 %v4555_v29, %v4538_v40 }
 0x342   : > { %5124 = vmatmul.mubr.msk.bf16.gmra.mrb[16].mxu1 %vm620_vm0, %v4603_v35 }
 0x370   : > { %v5097_v12 = vpop.f32.mrb[4].mxu0 }
 0x371   : > { %v4823_v54 = vmax.f32 %v5097_v12, 0.0  ;;  %v4694_v59 = vpop.f32.mrb[5].mxu0 }
 0x372   : > { %v4821_v27 = vmax.f32 %v4694_v59, 0.0  ;;  %v5098_v7 = vpop.f32.mrb[6].mxu0 }
 0x373   : > { %4855 = vst.msk [vmem:[%s6811_s26 + $0x10] sm:$0xff] %vm624_vm1, %v4823_v54  ;;  %v4824_v48 = vmax.f32 %v5098_v7, 0.0  ;;  %v4697_v42 = vpop.f32.mrb[7].mxu0 }
 0x374   : > { %4853 = vst.msk [vmem:[%s6811_s26] sm:$0xff] %vm624_vm1, %v4821_v27  ;;  %v4822_v13 = vmax.f32 %v4697_v42, 0.0 }
 0x375   : > { %4856 = vst.msk [vmem:[%s6811_s26 + $0x18] sm:$0xff] %vm624_vm1, %v4824_v48 }
 0x376   : > { %4854 = vst.msk [vmem:[%s6811_s26 + $0x8] sm:$0xff] %vm624_vm1, %v4822_v13 }
 0x37c   : > { %v5109_v1 = vpop.f32.mrb[0].mxu1 }
 0x37d   : > { %v4835_v32 = vmax.f32 %v5109_v1, 0.0  ;;  %v4742_v8 = vpop.f32.mrb[1].mxu1 }
 0x37e   : > { %v4833_v5 = vmax.f32 %v4742_v8, 0.0  ;;  %v5110_v16 = vpop.f32.mrb[2].mxu1 }
 0x37f   : > { %4867 = vst.msk [vmem:[%s6811_s26 + $0x70] sm:$0xff] %vm624_vm1, %v4835_v32  ;;  %v4836_v56 = vmax.f32 %v5110_v16, 0.0  ;;  %v4745_v57 = vpop.f32.mrb[3].mxu1 }
 0x380   : > { %4865 = vst.msk [vmem:[%s6811_s26 + $0x60] sm:$0xff] %vm624_vm1, %v4833_v5  ;;  %v4834_v36 = vmax.f32 %v4745_v57, 0.0 }
 0x381   : > { %4868 = vst.msk [vmem:[%s6811_s26 + $0x78] sm:$0xff] %vm624_vm1, %v4836_v56 }
 0x382   : > { %4866 = vst.msk [vmem:[%s6811_s26 + $0x68] sm:$0xff] %vm624_vm1, %v4834_v36 }
 0x3a4   : > { %v5101_v21 = vpop.f32.mrb[8].mxu0 }
 0x3a5   : > { %v4827_v44 = vmax.f32 %v5101_v21, 0.0  ;;  %v4710_v34 = vpop.f32.mrb[9].mxu0 }
 0x3a6   : > { %v4825_v43 = vmax.f32 %v4710_v34, 0.0  ;;  %v5102_v22 = vpop.f32.mrb[10].mxu0 }
 0x3a7   : > { %4859 = vst.msk [vmem:[%s6811_s26 + $0x30] sm:$0xff] %vm624_vm1, %v4827_v44  ;;  %v4828_v26 = vmax.f32 %v5102_v22, 0.0  ;;  %v4713_v30 = vpop.f32.mrb[11].mxu0 }
 0x3a8   : > { %4857 = vst.msk [vmem:[%s6811_s26 + $0x20] sm:$0xff] %vm624_vm1, %v4825_v43  ;;  %v4826_v60 = vmax.f32 %v4713_v30, 0.0 }
 0x3a9   : > { %4860 = vst.msk [vmem:[%s6811_s26 + $0x38] sm:$0xff] %vm624_vm1, %v4828_v26 }
 0x3aa   : > { %4858 = vst.msk [vmem:[%s6811_s26 + $0x28] sm:$0xff] %vm624_vm1, %v4826_v60 }
 0x3b1   : > { %v5113_v14 = vpop.f32.mrb[4].mxu1 }
 0x3b2   : > { %v4839_v50 = vmax.f32 %v5113_v14, 0.0  ;;  %v4758_v52 = vpop.f32.mrb[5].mxu1 }
 0x3b3   : > { %v4837_v31 = vmax.f32 %v4758_v52, 0.0  ;;  %v5114_v37 = vpop.f32.mrb[6].mxu1 }
 0x3b4   : > { %4871 = vst.msk [vmem:[%s6811_s26 + $0x90] sm:$0xff] %vm624_vm1, %v4839_v50  ;;  %v4840_v55 = vmax.f32 %v5114_v37, 0.0  ;;  %v4761_v46 = vpop.f32.mrb[7].mxu1 }
 0x3b5   : > { %4869 = vst.msk [vmem:[%s6811_s26 + $0x80] sm:$0xff] %vm624_vm1, %v4837_v31  ;;  %v4838_v63 = vmax.f32 %v4761_v46, 0.0 }
 0x3b6   : > { %4872 = vst.msk [vmem:[%s6811_s26 + $0x98] sm:$0xff] %vm624_vm1, %v4840_v55 }
 0x3b7   : > { %4870 = vst.msk [vmem:[%s6811_s26 + $0x88] sm:$0xff] %vm624_vm1, %v4838_v63 }
 0x3d7   : > { %v5105_v25 = vpop.f32.mrb[12].mxu0 }
 0x3d8   : > { %v4831_v62 = vmax.f32 %v5105_v25, 0.0  ;;  %v4726_v39 = vpop.f32.mrb[13].mxu0 }
 0x3d9   : > { %v4829_v24 = vmax.f32 %v4726_v39, 0.0  ;;  %v5106_v11 = vpop.f32.mrb[14].mxu0 }
 0x3da   : > { %4863 = vst.msk [vmem:[%s6811_s26 + $0x50] sm:$0xff] %vm624_vm1, %v4831_v62  ;;  %v4832_v49 = vmax.f32 %v5106_v11, 0.0  ;;  %v4729_v19 = vpop.f32.mrb[15].mxu0 }
 0x3db   : > { %4861 = vst.msk [vmem:[%s6811_s26 + $0x40] sm:$0xff] %vm624_vm1, %v4829_v24  ;;  %v4830_v58 = vmax.f32 %v4729_v19, 0.0 }
 0x3dc   : > { %4864 = vst.msk [vmem:[%s6811_s26 + $0x58] sm:$0xff] %vm624_vm1, %v4832_v49 }
 0x3dd   : > { %4862 = vst.msk [vmem:[%s6811_s26 + $0x48] sm:$0xff] %vm624_vm1, %v4830_v58 }
 0x3e4   : > { %v5117_v18 = vpop.f32.mrb[8].mxu1 }
 0x3e5   : > { %v4843_v20 = vmax.f32 %v5117_v18, 0.0  ;;  %v4774_v4 = vpop.f32.mrb[9].mxu1 }
 0x3e6   : > { %v4841_v0 = vmax.f32 %v4774_v4, 0.0  ;;  %v5118_v10 = vpop.f32.mrb[10].mxu1 }
 0x3e7   : > { %4875 = vst.msk [vmem:[%s6811_s26 + $0xb0] sm:$0xff] %vm624_vm1, %v4843_v20  ;;  %v4844_v6 = vmax.f32 %v5118_v10, 0.0  ;;  %v4777_v47 = vpop.f32.mrb[11].mxu1 }
 0x3e8   : > { %4873 = vst.msk [vmem:[%s6811_s26 + $0xa0] sm:$0xff] %vm624_vm1, %v4841_v0  ;;  %v4842_v61 = vmax.f32 %v4777_v47, 0.0 }
 0x3e9   : > { %4876 = vst.msk [vmem:[%s6811_s26 + $0xb8] sm:$0xff] %vm624_vm1, %v4844_v6 }
 0x3ea   : > { %4874 = vst.msk [vmem:[%s6811_s26 + $0xa8] sm:$0xff] %vm624_vm1, %v4842_v61 }
 0x3fd   : > { %v5121_v45 = vpop.f32.mrb[12].mxu1 }
 0x3fe   : > { %v4847_v3 = vmax.f32 %v5121_v45, 0.0  ;;  %v4790_v38 = vpop.f32.mrb[13].mxu1 }
 0x3ff   : > { %v4845_v2 = vmax.f32 %v4790_v38, 0.0  ;;  %v5122_v17 = vpop.f32.mrb[14].mxu1 }
 0x400   : > { %4879 = vst.msk [vmem:[%s6811_s26 + $0xd0] sm:$0xff] %vm624_vm1, %v4847_v3  ;;  %v4848_v28 = vmax.f32 %v5122_v17, 0.0  ;;  %v4793_v41 = vpop.f32.mrb[15].mxu1 }
 0x401   : > { %4877 = vst.msk [vmem:[%s6811_s26 + $0xc0] sm:$0xff] %vm624_vm1, %v4845_v2  ;;  %v4846_v33 = vmax.f32 %v4793_v41, 0.0 }
 0x402   : > { %4880 = vst.msk [vmem:[%s6811_s26 + $0xd8] sm:$0xff] %vm624_vm1, %v4848_v28 }
 0x403   : > { %4878 = vst.msk [vmem:[%s6811_s26 + $0xc8] sm:$0xff] %vm624_vm1, %v4846_v33 }
 0x415   : > { %v5125_v51 = vpop.f32.mrb[16].mxu1 }
 0x416   : > { %v4851_v23 = vmax.f32 %v5125_v51, 0.0  ;;  %v4806_v9 = vpop.f32.mrb[17].mxu1 }
 0x417   : > { %v4849_v15 = vmax.f32 %v4806_v9, 0.0  ;;  %v5126_v53 = vpop.f32.mrb[18].mxu1 }
 0x418   : > { %4883 = vst.msk [vmem:[%s6811_s26 + $0xf0] sm:$0xff] %vm624_vm1, %v4851_v23  ;;  %v4852_v40 = vmax.f32 %v5126_v53, 0.0  ;;  %v4809_v29 = vpop.f32.mrb[19].mxu1 }
 0x419   : > { %4881 = vst.msk [vmem:[%s6811_s26 + $0xe0] sm:$0xff] %vm624_vm1, %v4849_v15  ;;  %v4850_v35 = vmax.f32 %v4809_v29, 0.0 }
 0x41a   : > { %4884 = vst.msk [vmem:[%s6811_s26 + $0xf8] sm:$0xff] %vm624_vm1, %v4852_v40 }
 0x41b   : > { %4882 = vst.msk [vmem:[%s6811_s26 + $0xe8] sm:$0xff] %vm624_vm1, %v4850_v35 }
 0x41c   : > { %5253 = shalt.err (!%p5250_p5)
}
 0x41d   : > { %s5254_s9 = scalar_lea.hbm %s6876_s14, 4096  ;;  %s5258_s24 = scalar_lea.hbm %s6937_s4, 8192 }
 0x41e   : > { %p5255_p4 = scmp.ne.s32.totalorder %s6876_s14, %s5254_s9  ;;  %p5259_p12 = scmp.lt.u32.totalorder %s6876_s14, %s6937_s4 }
 0x41f   : > { %p5260_p1 = scmp.lt.u32.totalorder %s5258_s24, %s5254_s9  ;;  %p5262_p8 = scmp.lt.u32.totalorder %s5254_s9, %s6876_s14 }
 0x420   : > { %p5256_p7 = pnand %p5255_p4, %p7058_p9 }
 0x421   : > { %p5261_p3 = por %p5260_p1, %p5259_p12 }
 0x422   : > { %p5257_p10 = pneg %p5256_p7 }
 0x423   : > { %p5263_p11 = por %p5262_p8, %p5261_p3 }
 0x425   : > { %p5264_p0 = pnand %p5263_p11, %p5257_p10 }
 0x427   : > { %5267 = shalt.err (!%p5264_p0)
}
 0x428   : > { %s5339_s27 = smov 128   ;;  %s5340_s12 = smov 8  }
 0x429   : > { %5131 = dma.vmem_to_hbm [thread:$0]  (%p7058_p9), %s6878_s10, 4096, %s6876_s14, %s4886_s18, %s5339_s27, %s5339_s27, %s5340_s12  }
 0x42a PF: > { %s4917_s13 = sand.u32 1, %s5302_s15   ;;  %p7059_p6 = scmp.ne.s32.totalorder %s6977_s30, 0 }
 0x42b   : > { %p7060_p13 = scmp.ge.s32.totalorder %s5322_s20, 2  ;;  %s4918_s6 = scalar_lea.sflag [#allocation4], %s4917_s13 }
 0x42d   : > { %p5138_p2 = pnand %p7060_p13, %p7059_p6 }
 0x42f   : > { %5297 = dma.done.wait (!%p5138_p2), %s4918_s6, 4096  }
 0x430   : > { %5299 = vsyncadd (!%p5138_p2), %s4918_s6, 4294963200  ;;  %s20_s20 = sadd.s32 1, %s5322_s20   ;;  %s7061_s15 = smov %s5306_s16 }
 0x431   : > { %p17_p5 = scmp.ge.s32.totalorder %s20_s20, 4   ;;  %s7062_s16 = smov %s5310_s17 }
 0x432   : > { %s7063_s17 = smov %s5422_s29  ;;  %s7064_s18 = smov %s5318_s19 }
 0x433   : > { %s7065_s19 = smov %s7067_s23  ;;  %19 = sbr.rel (!%p17_p5) target bundleno = 6 (0x6), region = 87 }
 0x43a   :  { %4923 = vsyncpa [#allocation3], 1 }
 0x43b   :  { %4925 = vsyncpa [#allocation3 + $0x1], 1 }
 0x43c   :  { %4926 = vsyncpa [#allocation4], 1 }
 0x43d   :  { %4928 = vsyncpa [#allocation4 + $0x1], 1 }

</bundles_post_ra>
